<compile_context>
chip_gen: v5e
topology: v5e:2x2
jax: 0.10.0
libtpu: 0.0.40
codegen_flags: <defaults>
</compile_context>

<pallas_src>
import jax
import jax.numpy as jnp
import numpy as np
from jax.experimental import pallas as pl
from jax.experimental.pallas import tpu as pltpu

NEG_SLOPE = 0.01   # nn.LeakyReLU default
BN_EPS = 1e-5      # nn.BatchNorm2d default
LANES = 128
MXU_ALIGN = 256    # v6e/v7x MXU pass size; multiple of 128 so also fine on v5e


def _round_up(x, m):
    return (x + m - 1) // m * m


def _cdiv(a, b):
    return -(-a // b)


def _physical_vmem_bytes():
    """Per-core physical VMEM (trace-time query; conservative fallback)."""
    try:
        return int(pltpu.get_tpu_info().vmem_capacity_bytes)
    except Exception:
        return 64 * 1024 * 1024        # v7x per-TensorCore size (smallest current gen)


def _choose_tiling(mp, bytes_per_row, budget_bytes, cap=2048, align=MXU_ALIGN):
    """Largest ~balanced row tile whose double-buffered streams fit the budget.

    Returns (tile_rows, num_tiles, padded_rows).  Prefers an even tile count (v7x
    two-TensorCore balance) when that does not create a fully-empty tile.
    """
    tm_max = budget_bytes // max(bytes_per_row, 1)
    tm_max = max(align, min(cap, (tm_max // align) * align))
    n = _cdiv(mp, tm_max)
    tm = _round_up(_cdiv(mp, n), align)
    if n > 1 and n % 2 == 1:
        n2 = n + 1
        tm2 = _round_up(_cdiv(mp, n2), align)
        if tm2 * (n2 - 1) < mp:        # last tile still holds real rows
            n, tm = n2, tm2
    return int(tm), int(n), int(tm * n)


# ----------------------------- Pallas kernels --------------------------------

def _stats_kernel(p_ref, m_ref, w_ref, b_ref, st_ref):
    # ConvTranspose2d hot path (phase-decomposed): bf16 MXU matmul, f32 accumulation.
    y = jnp.dot(p_ref[...], w_ref[...], preferred_element_type=jnp.float32)
    y = y + b_ref[...]
    y = jnp.maximum(y, NEG_SLOPE * y)                       # LeakyReLU
    # Masked BatchNorm partials on the (otherwise idle) MXU: m_ref holds the 0/1
    # phase-validity mask pre-transposed to (4, TM); contraction over the tile rows.
    m = m_ref[...]
    st_ref[0:4, :] = jnp.dot(m, y, preferred_element_type=jnp.float32)       # sum(y)
    st_ref[4:8, :] = jnp.dot(m, y * y, preferred_element_type=jnp.float32)   # sum(y^2)


def _apply_kernel(p_ref, w_ref, b_ref, sc_ref, sh_ref, o_ref):
    # Recompute the cheap tiny-K matmul (2*KC bf16 bytes/row << 8*CP f32 bytes/row of
    # a y round-trip) and apply the precomputed BN scale/shift (lane-dense store).
    y = jnp.dot(p_ref[...], w_ref[...], preferred_element_type=jnp.float32)
    y = y + b_ref[...]
    y = jnp.maximum(y, NEG_SLOPE * y)                       # LeakyReLU
    o_ref[...] = y * sc_ref[...] + sh_ref[...]


# ------------------------------ host wrapper ---------------------------------

def up_forward(x_nchw, weight, bias, gamma, beta, *, kernel=3, pad=0, stride=2):
    """Up.forward: x (N,Cin,H,W) f32, weight (Cin,Cout,3,3) (ConvTranspose2d layout),
    bias/gamma/beta (Cout,).  Returns (N, Cout, 2H+1, 2W+1) f32 (NCHW)."""
    assert kernel == 3 and pad == 0 and stride == 2, \
        "phase decomposition is specialized to UResNet's Up config (k=3, s=2, p=0)"
    N, Cin, H, W = x_nchw.shape
    Cin_w, Cout, K, Kw = weight.shape
    assert Cin == Cin_w and K == 3 and Kw == 3
    Hout = (H - 1) * stride + K          # 2H + 1
    Wout = (W - 1) * stride + K          # 2W + 1

    KC = 4 * Cin                         # 2x2 patch taps * Cin (contraction)
    C4 = 4 * Cout                        # 4 phases * Cout
    CP = _round_up(C4, LANES)            # lane-dense padded output channel axis
    Mp = N * (H + 1) * (W + 1)           # rows of the shared phase patch matrix

    # ---------- im2col in bf16 (zero FLOPs; no f32 slab materialize+cast) ----------
    # output(2m+py, 2n+px, co) = sum_{a,b in {0,1}, ci} xpad[m+a, n+b, ci] *
    #                            Wc[a, b, ci, 2*py+px, co]
    x = jnp.transpose(x_nchw, (0, 2, 3, 1)).astype(jnp.bfloat16)      # NHWC, bf16
    xpad = jnp.pad(x, ((0, 0), (1, 1), (1, 1), (0, 0)))               # (N, H+2, W+2, Cin)
    cols = [xpad[:, a:a + H + 1, b:b + W + 1, :] for a in (0, 1) for b in (0, 1)]
    patches = jnp.concatenate(cols, axis=-1).reshape(Mp, KC)

    # Combined phase weight: Wc[a,b,ci,p,co] = w[ci,co, py+2-2a, px+2-2b] (0 if OOB).
    wc = jnp.zeros((2, 2, Cin, 4, Cout), jnp.float32)
    for py in (0, 1):
        for px in (0, 1):
            p = py * 2 + px
            for a in (0, 1):
                ky = py + 2 - 2 * a
                if not 0 <= ky <= 2:
                    continue
                for b in (0, 1):
                    kx = px + 2 - 2 * b
                    if not 0 <= kx <= 2:
                        continue
                    wc = wc.at[a, b, :, p, :].set(
                        weight[:, :, ky, kx].astype(jnp.float32))
    w2d = jnp.zeros((KC, CP), jnp.float32).at[:, :C4].set(wc.reshape(KC, C4))
    w2d = w2d.astype(jnp.bfloat16)

    def _tile_cp(v):  # per-channel param tiled over the 4 phase column groups
        t = jnp.tile(v.astype(jnp.float32), 4)
        return jnp.pad(t, (0, CP - C4)).reshape(1, CP)

    bias_c = _tile_cp(bias)

    # ---------------------- generation-aware tiling ----------------------
    phys_vmem = _physical_vmem_bytes()
    stream_budget = min(phys_vmem * 3 // 8, 48 * 1024 * 1024)   # ~24 MiB v7x, 48 MiB v5e/v6e
    bytes_per_row = 2 * (KC * 2 + 4 * 4 + CP * 4)               # double-buffered streams
    TM, num_tiles, Mp_pad = _choose_tiling(Mp, bytes_per_row, stream_budget)

    patches = jnp.pad(patches, ((0, Mp_pad - Mp), (0, 0)))

    # Static per-phase row-validity mask (numpy), pre-transposed to (4, Mp_pad):
    # phase (py,px) at patch position (m,n) is a real output pixel iff
    # (py==0 or m<H) and (px==0 or n<W); padded rows (>= Mp) get mask 0.
    mh = (np.arange(H + 1) < H).astype(np.float32)
    nw = (np.arange(W + 1) < W).astype(np.float32)
    rm = np.zeros((N, H + 1, W + 1, 4), np.float32)
    rm[..., 0] = 1.0
    rm[..., 1] = nw[None, None, :]
    rm[..., 2] = mh[None, :, None]
    rm[..., 3] = mh[None, :, None] * nw[None, None, :]
    rowmask = np.zeros((Mp_pad, 4), np.float32)
    rowmask[:Mp] = rm.reshape(Mp, 4)
    mT = jnp.asarray(np.ascontiguousarray(rowmask.T))            # (4, Mp_pad)

    # Compiler params / cost hints.
    resident = KC * CP * 2 + 4 * CP * 4
    vmem_est = resident + 2 * TM * (KC * 2 + 4 * 4 + CP * 4) + 2 * 8 * CP * 4
    vmem_limit = int(min(max(vmem_est + (8 << 20), 32 << 20), phys_vmem * 7 // 10))
    cparams = pltpu.CompilerParams(dimension_semantics=("parallel",),
                                   vmem_limit_bytes=vmem_limit)
    cost1 = pl.CostEstimate(
        flops=int(2 * Mp_pad * KC * CP + 4 * Mp_pad * 4 * CP + 4 * Mp_pad * CP),
        transcendentals=0,
        bytes_accessed=int(Mp_pad * KC * 2 + Mp_pad * 4 * 4 + KC * CP * 2 + CP * 4
                           + num_tiles * 8 * CP * 4))
    cost2 = pl.CostEstimate(
        flops=int(2 * Mp_pad * KC * CP + 5 * Mp_pad * CP),
        transcendentals=0,
        bytes_accessed=int(Mp_pad * KC * 2 + KC * CP * 2 + 3 * CP * 4
                           + Mp_pad * CP * 4))

    # ------- pass 1 (stats-only): matmul + bias + LeakyReLU + masked stat partials -------
    part = pl.pallas_call(
        _stats_kernel,
        grid=(num_tiles,),
        in_specs=[
            pl.BlockSpec((TM, KC), lambda i: (i, 0)),     # patches (bf16 stream)
            pl.BlockSpec((4, TM), lambda i: (0, i)),      # phase masks, pre-transposed
            pl.BlockSpec((KC, CP), lambda i: (0, 0)),     # combined weight (resident)
            pl.BlockSpec((1, CP), lambda i: (0, 0)),      # bias (phase-tiled)
        ],
        out_specs=pl.BlockSpec((None, 8, CP), lambda i: (i, 0, 0)),
        out_shape=jax.ShapeDtypeStruct((num_tiles, 8, CP), jnp.float32),
        compiler_params=cparams,
        cost_estimate=cost1,
    )(patches, mT, w2d, bias_c)

    # ------- BN finalize hoisted out of the per-tile grid (tiny host-JAX math) -------
    stats = jnp.sum(part, axis=0)                         # (8, CP)
    s12 = stats[:, :C4].reshape(2, 4, 4, Cout)            # (sum|sumsq, mask phase, col phase, ch)
    sums = jnp.trace(s12, axis1=1, axis2=2)               # (2, Cout): matching phase, summed
    inv_count = 1.0 / float(N * Hout * Wout)
    mean = sums[0] * inv_count
    var = jnp.maximum(sums[1] * inv_count - mean * mean, 0.0)   # biased variance
    scale = gamma.astype(jnp.float32) * jax.lax.rsqrt(var + BN_EPS)
    shift = beta.astype(jnp.float32) - mean * scale
    scale_c, shift_c = _tile_cp(scale), _tile_cp(shift)

    # ------- pass 2: recompute conv + LeakyReLU, apply BN (lane-dense f32 output) -------
    out2d = pl.pallas_call(
        _apply_kernel,
        grid=(num_tiles,),
        in_specs=[
            pl.BlockSpec((TM, KC), lambda i: (i, 0)),     # patches (bf16 stream)
            pl.BlockSpec((KC, CP), lambda i: (0, 0)),     # combined weight (resident)
            pl.BlockSpec((1, CP), lambda i: (0, 0)),      # bias
            pl.BlockSpec((1, CP), lambda i: (0, 0)),      # BN scale (phase-tiled)
            pl.BlockSpec((1, CP), lambda i: (0, 0)),      # BN shift (phase-tiled)
        ],
        out_specs=pl.BlockSpec((TM, CP), lambda i: (i, 0)),
        out_shape=jax.ShapeDtypeStruct((Mp_pad, CP), jnp.float32),
        compiler_params=cparams,
        cost_estimate=cost2,
    )(patches, w2d, bias_c, scale_c, shift_c)

    # ---------------- layout finalize in plain JAX (zero FLOPs) ----------------
    ph = out2d[:Mp, :C4].reshape(N, H + 1, W + 1, 4, Cout)
    row_even = jnp.stack([ph[..., 0, :], ph[..., 1, :]], axis=3).reshape(
        N, H + 1, 2 * (W + 1), Cout)
    row_odd = jnp.stack([ph[..., 2, :], ph[..., 3, :]], axis=3).reshape(
        N, H + 1, 2 * (W + 1), Cout)
    full = jnp.stack([row_even, row_odd], axis=2).reshape(
        N, 2 * (H + 1), 2 * (W + 1), Cout)
    out_nhwc = full[:, :Hout, :Wout, :]
    return jnp.transpose(out_nhwc, (0, 3, 1, 2))              # back to NCHW


def up_reference(x_nchw, weight, bias, gamma, beta, quantize_bf16=False):
    """Pure-JAX reference mirroring PyTorch Up.forward (training-mode BatchNorm)."""
    if quantize_bf16:  # mirror the kernel's bf16 operand quantization
        x_nchw = x_nchw.astype(jnp.bfloat16).astype(jnp.float32)
        weight = weight.astype(jnp.bfloat16).astype(jnp.float32)
    K = weight.shape[2]
    P = K - 1  # pad = 0
    w_conv = jnp.transpose(jnp.flip(weight, axis=(2, 3)), (1, 0, 2, 3))  # (Cout,Cin,K,K)
    y = jax.lax.conv_general_dilated(
        x_nchw, w_conv, window_strides=(1, 1), padding=[(P, P), (P, P)],
        lhs_dilation=(2, 2), dimension_numbers=("NCHW", "OIHW", "NCHW"),
        precision=jax.lax.Precision.HIGHEST)
    y = y + bias.reshape(1, -1, 1, 1)
    y = jnp.where(y > 0, y, NEG_SLOPE * y)
    mean = jnp.mean(y, axis=(0, 2, 3), keepdims=True)
    var = jnp.mean((y - mean) ** 2, axis=(0, 2, 3), keepdims=True)
    return (y - mean) * jax.lax.rsqrt(var + BN_EPS) * gamma.reshape(1, -1, 1, 1) \
        + beta.reshape(1, -1, 1, 1)


if __name__ == "__main__":
    key = jax.random.PRNGKey(0)
    k1, k2, k3 = jax.random.split(key, 3)

    # Small shapes consistent with Up(in_ch=4, out_ch=8) (kernel=3, pad=0, stride=2).
    N, Cin, Cout, H, W = 2, 4, 8, 16, 16
    K, PAD, STRIDE = 3, 0, 2

    x = jax.random.normal(k1, (N, Cin, H, W), jnp.float32)
    bound = 1.0 / (Cin * K * K) ** 0.5
    weight = jax.random.uniform(k2, (Cin, Cout, K, K), jnp.float32, -bound, bound)
    bias = jax.random.uniform(k3, (Cout,), jnp.float32, -bound, bound)
    gamma = jnp.ones((Cout,), jnp.float32)    # fresh BatchNorm2d weight
    beta = jnp.zeros((Cout,), jnp.float32)    # fresh BatchNorm2d bias

    out = jax.block_until_ready(jax.jit(up_forward)(x, weight, bias, gamma, beta))

    Hout = (H - 1) * STRIDE - 2 * PAD + K
    assert out.shape == (N, Cout, Hout, Hout), out.shape

    # Strict check vs. a reference with matching bf16 operand quantization (slightly
    # looser than pure f32 because the BN stat contraction runs on the MXU).
    ref_q = up_reference(x, weight, bias, gamma, beta, quantize_bf16=True)
    if not jnp.allclose(out, ref_q, atol=2e-3, rtol=2e-3):
        err = float(jnp.max(jnp.abs(out - ref_q)))
        raise AssertionError(
            f"Pallas Up kernel mismatch vs bf16-matched reference (max abs err {err:.3e})")

    # Loose sanity check vs. the full-f32 reference (differences = bf16 quantization).
    ref_f = up_reference(x, weight, bias, gamma, beta, quantize_bf16=False)
    if not jnp.allclose(out, ref_f, atol=1e-1, rtol=1e-1):
        err = float(jnp.max(jnp.abs(out - ref_f)))
        raise AssertionError(
            f"Pallas Up kernel mismatch vs f32 reference (max abs err {err:.3e})")

    print("KERNEL_OK")
</pallas_src>

<mosaic_0001>
module attributes {stable_mosaic.version = 11 : i64} {
  func.func @_stats_kernel(%arg0: i32, %arg1: memref<768x16xbf16, #tpu.memory_space<vmem>>, %arg2: memref<4x768xf32, #tpu.memory_space<vmem>>, %arg3: memref<16x128xbf16, #tpu.memory_space<vmem>>, %arg4: memref<1x128xf32, #tpu.memory_space<vmem>>, %arg5: memref<1x8x128xf32, #tpu.memory_space<vmem>>) attributes {dimension_semantics = [#tpu.dimension_semantics<parallel>], iteration_bounds = array<i64: 1>, scalar_prefetch = 0 : i64, scratch_operands = 0 : i64, tpu.core_type = #tpu.core_type<tc>, window_params = [{transform_indices = @transform_0, window_bounds = array<i64: 768, 16>}, {transform_indices = @transform_1, window_bounds = array<i64: 4, 768>}, {pipeline_mode = #tpu.pipeline_mode<synchronous>, transform_indices = @transform_2, window_bounds = array<i64: 16, 128>}, {pipeline_mode = #tpu.pipeline_mode<synchronous>, transform_indices = @transform_3, window_bounds = array<i64: 1, 128>}, {transform_indices = @transform_4, window_bounds = array<i64: 1, 8, 128>}]} {
    %c0 = arith.constant 0 : index
    %c0_0 = arith.constant 0 : index
    %0 = vector.load %arg1[%c0, %c0_0] : memref<768x16xbf16, #tpu.memory_space<vmem>>, vector<768x16xbf16>
    %c0_1 = arith.constant 0 : index
    %c0_2 = arith.constant 0 : index
    %1 = vector.load %arg3[%c0_1, %c0_2] : memref<16x128xbf16, #tpu.memory_space<vmem>>, vector<16x128xbf16>
    %cst = arith.constant dense<0.000000e+00> : vector<768x128xf32>
    %2 = tpu.matmul %0, %1, %cst {dimension_numbers = #tpu.dot_dimension_numbers<[1], [0], [0], [1], [0, 0, 1, 1], [], []>} : vector<768x16xbf16>, vector<16x128xbf16>, vector<768x128xf32> -> vector<768x128xf32>
    %c0_3 = arith.constant 0 : index
    %c0_4 = arith.constant 0 : index
    %3 = vector.load %arg4[%c0_3, %c0_4] : memref<1x128xf32, #tpu.memory_space<vmem>>, vector<1x128xf32>
    %4 = vector.broadcast %3 : vector<1x128xf32> to vector<768x128xf32>
    %5 = arith.addf %2, %4 : vector<768x128xf32>
    %cst_5 = arith.constant 0.00999999977 : f32
    %6 = vector.broadcast %cst_5 : f32 to vector<768x128xf32>
    %7 = arith.mulf %6, %5 : vector<768x128xf32>
    %8 = arith.maximumf %5, %7 : vector<768x128xf32>
    %c0_6 = arith.constant 0 : index
    %c0_7 = arith.constant 0 : index
    %9 = vector.load %arg2[%c0_6, %c0_7] : memref<4x768xf32, #tpu.memory_space<vmem>>, vector<4x768xf32>
    %cst_8 = arith.constant dense<0.000000e+00> : vector<4x128xf32>
    %10 = tpu.matmul %9, %8, %cst_8 {dimension_numbers = #tpu.dot_dimension_numbers<[1], [0], [0], [1], [0, 0, 1, 1], [], []>} : vector<4x768xf32>, vector<768x128xf32>, vector<4x128xf32> -> vector<4x128xf32>
    %c0_9 = arith.constant 0 : index
    %c0_10 = arith.constant 0 : index
    %c0_11 = arith.constant 0 : index
    %11 = vector.load %arg5[%c0_9, %c0_10, %c0_11] : memref<1x8x128xf32, #tpu.memory_space<vmem>>, vector<1x4x128xf32>
    %12 = vector.shape_cast %11 : vector<1x4x128xf32> to vector<4x128xf32>
    %13 = vector.shape_cast %10 : vector<4x128xf32> to vector<1x4x128xf32>
    tpu.vector_store %arg5[%c0_9, %c0_10, %c0_11], %13 {strides = array<i32>} : memref<1x8x128xf32, #tpu.memory_space<vmem>>, vector<1x4x128xf32>,
    %14 = arith.mulf %8, %8 : vector<768x128xf32>
    %cst_12 = arith.constant dense<0.000000e+00> : vector<4x128xf32>
    %15 = tpu.matmul %9, %14, %cst_12 {dimension_numbers = #tpu.dot_dimension_numbers<[1], [0], [0], [1], [0, 0, 1, 1], [], []>} : vector<4x768xf32>, vector<768x128xf32>, vector<4x128xf32> -> vector<4x128xf32>
    %c0_13 = arith.constant 0 : index
    %c4 = arith.constant 4 : index
    %c0_14 = arith.constant 0 : index
    %16 = vector.load %arg5[%c0_13, %c4, %c0_14] : memref<1x8x128xf32, #tpu.memory_space<vmem>>, vector<1x4x128xf32>
    %17 = vector.shape_cast %16 : vector<1x4x128xf32> to vector<4x128xf32>
    %18 = vector.shape_cast %15 : vector<4x128xf32> to vector<1x4x128xf32>
    tpu.vector_store %arg5[%c0_13, %c4, %c0_14], %18 {strides = array<i32>} : memref<1x8x128xf32, #tpu.memory_space<vmem>>, vector<1x4x128xf32>,
    return
  }
  func.func @transform_0(%arg0: i32) -> (i32, i32) {
    %c0_i32 = arith.constant 0 : i32
    %c0_i32_0 = arith.constant 0 : i32
    return %arg0, %c0_i32 : i32, i32
  }
  func.func @transform_1(%arg0: i32) -> (i32, i32) {
    %c0_i32 = arith.constant 0 : i32
    %c0_i32_0 = arith.constant 0 : i32
    return %c0_i32, %arg0 : i32, i32
  }
  func.func @transform_2(%arg0: i32) -> (i32, i32) {
    %c0_i32 = arith.constant 0 : i32
    %c0_i32_0 = arith.constant 0 : i32
    %c0_i32_1 = arith.constant 0 : i32
    return %c0_i32, %c0_i32_0 : i32, i32
  }
  func.func @transform_3(%arg0: i32) -> (i32, i32) {
    %c0_i32 = arith.constant 0 : i32
    %c0_i32_0 = arith.constant 0 : i32
    %c0_i32_1 = arith.constant 0 : i32
    return %c0_i32, %c0_i32_0 : i32, i32
  }
  func.func @transform_4(%arg0: i32) -> (i32, i32, i32) {
    %c0_i32 = arith.constant 0 : i32
    %c0_i32_0 = arith.constant 0 : i32
    %c0_i32_1 = arith.constant 0 : i32
    return %arg0, %c0_i32, %c0_i32_0 : i32, i32, i32
  }
}

module attributes {stable_mosaic.version = 11 : i64} {
  func.func @_apply_kernel(%arg0: i32, %arg1: memref<768x16xbf16, #tpu.memory_space<vmem>>, %arg2: memref<16x128xbf16, #tpu.memory_space<vmem>>, %arg3: memref<1x128xf32, #tpu.memory_space<vmem>>, %arg4: memref<1x128xf32, #tpu.memory_space<vmem>>, %arg5: memref<1x128xf32, #tpu.memory_space<vmem>>, %arg6: memref<768x128xf32, #tpu.memory_space<vmem>>) attributes {dimension_semantics = [#tpu.dimension_semantics<parallel>], iteration_bounds = array<i64: 1>, scalar_prefetch = 0 : i64, scratch_operands = 0 : i64, tpu.core_type = #tpu.core_type<tc>, window_params = [{transform_indices = @transform_0, window_bounds = array<i64: 768, 16>}, {pipeline_mode = #tpu.pipeline_mode<synchronous>, transform_indices = @transform_1, window_bounds = array<i64: 16, 128>}, {pipeline_mode = #tpu.pipeline_mode<synchronous>, transform_indices = @transform_2, window_bounds = array<i64: 1, 128>}, {pipeline_mode = #tpu.pipeline_mode<synchronous>, transform_indices = @transform_3, window_bounds = array<i64: 1, 128>}, {pipeline_mode = #tpu.pipeline_mode<synchronous>, transform_indices = @transform_4, window_bounds = array<i64: 1, 128>}, {transform_indices = @transform_5, window_bounds = array<i64: 768, 128>}]} {
    %c0 = arith.constant 0 : index
    %c0_0 = arith.constant 0 : index
    %0 = vector.load %arg1[%c0, %c0_0] : memref<768x16xbf16, #tpu.memory_space<vmem>>, vector<768x16xbf16>
    %c0_1 = arith.constant 0 : index
    %c0_2 = arith.constant 0 : index
    %1 = vector.load %arg2[%c0_1, %c0_2] : memref<16x128xbf16, #tpu.memory_space<vmem>>, vector<16x128xbf16>
    %cst = arith.constant dense<0.000000e+00> : vector<768x128xf32>
    %2 = tpu.matmul %0, %1, %cst {dimension_numbers = #tpu.dot_dimension_numbers<[1], [0], [0], [1], [0, 0, 1, 1], [], []>} : vector<768x16xbf16>, vector<16x128xbf16>, vector<768x128xf32> -> vector<768x128xf32>
    %c0_3 = arith.constant 0 : index
    %c0_4 = arith.constant 0 : index
    %3 = vector.load %arg3[%c0_3, %c0_4] : memref<1x128xf32, #tpu.memory_space<vmem>>, vector<1x128xf32>
    %4 = vector.broadcast %3 : vector<1x128xf32> to vector<768x128xf32>
    %5 = arith.addf %2, %4 : vector<768x128xf32>
    %cst_5 = arith.constant 0.00999999977 : f32
    %6 = vector.broadcast %cst_5 : f32 to vector<768x128xf32>
    %7 = arith.mulf %6, %5 : vector<768x128xf32>
    %8 = arith.maximumf %5, %7 : vector<768x128xf32>
    %c0_6 = arith.constant 0 : index
    %c0_7 = arith.constant 0 : index
    %9 = vector.load %arg4[%c0_6, %c0_7] : memref<1x128xf32, #tpu.memory_space<vmem>>, vector<1x128xf32>
    %10 = vector.broadcast %9 : vector<1x128xf32> to vector<768x128xf32>
    %11 = arith.mulf %8, %10 : vector<768x128xf32>
    %c0_8 = arith.constant 0 : index
    %c0_9 = arith.constant 0 : index
    %12 = vector.load %arg5[%c0_8, %c0_9] : memref<1x128xf32, #tpu.memory_space<vmem>>, vector<1x128xf32>
    %13 = vector.broadcast %12 : vector<1x128xf32> to vector<768x128xf32>
    %14 = arith.addf %11, %13 : vector<768x128xf32>
    %c0_10 = arith.constant 0 : index
    %c0_11 = arith.constant 0 : index
    %15 = vector.load %arg6[%c0_10, %c0_11] : memref<768x128xf32, #tpu.memory_space<vmem>>, vector<768x128xf32>
    tpu.vector_store %arg6[%c0_10, %c0_11], %14 {strides = array<i32>} : memref<768x128xf32, #tpu.memory_space<vmem>>, vector<768x128xf32>,
    return
  }
  func.func @transform_0(%arg0: i32) -> (i32, i32) {
    %c0_i32 = arith.constant 0 : i32
    %c0_i32_0 = arith.constant 0 : i32
    return %arg0, %c0_i32 : i32, i32
  }
  func.func @transform_1(%arg0: i32) -> (i32, i32) {
    %c0_i32 = arith.constant 0 : i32
    %c0_i32_0 = arith.constant 0 : i32
    %c0_i32_1 = arith.constant 0 : i32
    return %c0_i32, %c0_i32_0 : i32, i32
  }
  func.func @transform_2(%arg0: i32) -> (i32, i32) {
    %c0_i32 = arith.constant 0 : i32
    %c0_i32_0 = arith.constant 0 : i32
    %c0_i32_1 = arith.constant 0 : i32
    return %c0_i32, %c0_i32_0 : i32, i32
  }
  func.func @transform_3(%arg0: i32) -> (i32, i32) {
    %c0_i32 = arith.constant 0 : i32
    %c0_i32_0 = arith.constant 0 : i32
    %c0_i32_1 = arith.constant 0 : i32
    return %c0_i32, %c0_i32_0 : i32, i32
  }
  func.func @transform_4(%arg0: i32) -> (i32, i32) {
    %c0_i32 = arith.constant 0 : i32
    %c0_i32_0 = arith.constant 0 : i32
    %c0_i32_1 = arith.constant 0 : i32
    return %c0_i32, %c0_i32_0 : i32, i32
  }
  func.func @transform_5(%arg0: i32) -> (i32, i32) {
    %c0_i32 = arith.constant 0 : i32
    %c0_i32_0 = arith.constant 0 : i32
    return %arg0, %c0_i32 : i32, i32
  }
}

</mosaic_0001>

<bundles_post_ra>
// kernel: tile.18
= control target key start
LH: loop header
LB: loop body
LE: loop exit
PB: predicated region body
PF: predicated region fallthrough
CT: control target
= control target key end

     0   :  { %s22_s0 = inlined_call_operand.vmem [shape: f32[8], index: 0, kind: input, shape index: {}]   ;;  %s23_s1 = inlined_call_operand.vmem [shape: f32[4,8], index: 1, kind: output, shape index: {}]  }
   0x1   :  { %v4_v0 = vld [vmem:[%s22_s0] ss:$0 sm:$0xff] }
   0x2   :  { %5 = vst [vmem:[%s23_s1] sm:$0xf] %v4_v0 }

// kernel: tile.19
= control target key start
LH: loop header
LB: loop body
LE: loop exit
PB: predicated region body
PF: predicated region fallthrough
CT: control target
= control target key end

     0   :  { %s37_s8 = smov 8   ;;  %s38_s9 = smov 16   ;;  %vm7_vm0 = vcmask 64512   ;;  %vm13_vm1 = vcmask 261312   ;;  %vm19_vm2 = vcmask 195712   ;;  %vm25_vm3 = vcmask 130112   ;;  %s55_s0 = inlined_call_operand.vmem [shape: f32[4,8], index: 0, kind: input, shape index: {}]   ;;  %s56_s1 = inlined_call_operand.vmem [shape: f32[32], index: 1, kind: output, shape index: {}]  }
   0x1   :  { %v4_v0 = vld [vmem:[%s55_s0] sm:$0xf]  ;;  %s36_s0 = smov 24  }
   0x2   :  { %5 = vst [vmem:[#allocation1] sm:$0xf] %v4_v0 }
   0x9   :  { %v10_v1 = vld [vmem:[#allocation1 + $0x3] sm:$0x1]   ;;  %v22_v2 = vld [vmem:[#allocation1 + $0x1] sm:$0x1]   ;;  %v16_v3 = vld [vmem:[#allocation1 + $0x2] sm:$0x1]  }
   0xa   :  { %11 = vrot.lane.b32.xlu0 %v10_v1, %s36_s0  ;;  %23 = vrot.lane.b32.xlu1 %v22_v2, %s37_s8  ;;  %v6_v4 = vld [vmem:[#allocation1] sm:$0x1]  }
   0xb   :  { %8 = vst.msk [vmem:[#allocation0] sm:$0x1] %vm7_vm0, %v6_v4  }
  0x12   :  { %17 = vrot.lane.b32.xlu0 %v16_v3, %s38_s9 }
  0x7c   :  { %v12_v5 = vpop.permute.xlu0 %11   ;;  %v24_v6 = vpop.permute.xlu1 %23  }
  0x7d   :  { %14 = vst.msk [vmem:[#allocation0] sm:$0x1] %vm13_vm1, %v12_v5  }
  0x84   :  { %v18_v7 = vpop.permute.xlu0 %17  }
  0x85   :  { %20 = vst.msk [vmem:[#allocation0] sm:$0x1] %vm19_vm2, %v18_v7  }
  0x86   :  { %26 = vst.msk [vmem:[#allocation0] sm:$0x1] %vm25_vm3, %v24_v6  }
  0x8d   :  { %v29_v8 = vld [vmem:[#allocation0] sm:$0x1] }
  0x8e   :  { %32 = vst [vmem:[%s56_s1] sm:$0x1] %v29_v8 }

// kernel: up_forward.2
= control target key start
LH: loop header
LB: loop body
LE: loop exit
PB: predicated region body
PF: predicated region fallthrough
CT: control target
= control target key end

     0   :  { %vm366_vm0 = vcmask 130048   ;;  %s2663_s2 = inlined_call_operand.vmem [shape: bf16[16,128], index: 2, kind: input, shape index: {}]   ;;  %s2664_s0 = inlined_call_operand.vmem [shape: bf16[768,16], index: 0, kind: input, shape index: {}]   ;;  %s2665_s3 = inlined_call_operand.vmem [shape: f32[1,128], index: 3, kind: input, shape index: {}]   ;;  %s2666_s1 = inlined_call_operand.vmem [shape: f32[4,768], index: 1, kind: input, shape index: {}]   ;;  %s2667_s4 = inlined_call_operand.vmem [shape: f32[1,8,128], index: 4, kind: output, shape index: {}]  }
   0x1   :  { %v1626_v0 = vld [vmem:[%s2663_s2] sm:$0xff]  ;;  %v1596_v2 = vld [vmem:[%s2664_s0 + $0x90] sm:$0xff]  ;;  %v1579_v3 = vld [vmem:[%s2664_s0 + $0x8] sm:$0xff] }
   0x2   :  { %v1578_v1 = vld [vmem:[%s2664_s0] sm:$0xff]  ;;  %518 = vmatpush.bf16.msra.mxu0 %v1626_v0  ;;  %1627 = vmatpush.bf16.msra.mxu1 %v1626_v0  ;;  %v1597_v4 = vld [vmem:[%s2664_s0 + $0x98] sm:$0xff]  ;;  %v1580_v5 = vld [vmem:[%s2664_s0 + $0x10] sm:$0xff] }
   0x3   :  { %1628 = vmatpush.bf16.msra.mxu2 %v1626_v0  ;;  %1629 = vmatpush.bf16.msra.mxu3 %v1626_v0  ;;  %v1598_v6 = vld [vmem:[%s2664_s0 + $0xa0] sm:$0xff]  ;;  %v1581_v7 = vld [vmem:[%s2664_s0 + $0x18] sm:$0xff]  ;;  %v1599_v8 = vld [vmem:[%s2664_s0 + $0xa8] sm:$0xff] }
   0x4   :  { %v1582_v9 = vld [vmem:[%s2664_s0 + $0x20] sm:$0xff]  ;;  %v1600_v10 = vld [vmem:[%s2664_s0 + $0xb0] sm:$0xff]  ;;  %v1607_v11 = vld [vmem:[%s2664_s0 + $0xe8] sm:$0xff] }
   0x5   :  { %1530 = vmatmul.msk.bf16.vlgmr.msra.gmra.mxu0 %vm366_vm0, %v1578_v1  ;;  %1548 = vmatmul.msk.bf16.vlgmr.msra.gmra.mxu1 %vm366_vm0, %v1596_v2  ;;  %v1583_v12 = vld [vmem:[%s2664_s0 + $0x28] sm:$0xff]  ;;  %v1601_v13 = vld [vmem:[%s2664_s0 + $0xb8] sm:$0xff]  ;;  %v1608_v14 = vld [vmem:[%s2664_s0 + $0xf0] sm:$0xff] }
   0x6   :  { %1559 = vmatmul.msk.bf16.vlgmr.msra.gmra.mxu2 %vm366_vm0, %v1607_v11  ;;  %v1584_v15 = vld [vmem:[%s2664_s0 + $0x30] sm:$0xff]  ;;  %v1602_v16 = vld [vmem:[%s2664_s0 + $0xc0] sm:$0xff]  ;;  %v1609_v17 = vld [vmem:[%s2664_s0 + $0xf8] sm:$0xff] }
   0x7   :  { %v1585_v18 = vld [vmem:[%s2664_s0 + $0x38] sm:$0xff]  ;;  %v1603_v19 = vld [vmem:[%s2664_s0 + $0xc8] sm:$0xff]  ;;  %v1610_v20 = vld [vmem:[%s2664_s0 + $0x100] sm:$0xff] }
   0x8   :  { %v1618_v21 = vld [vmem:[%s2664_s0 + $0x140] sm:$0xff]  ;;  %v1604_v23 = vld [vmem:[%s2664_s0 + $0xd0] sm:$0xff]  ;;  %v1611_v26 = vld [vmem:[%s2664_s0 + $0x108] sm:$0xff] }
   0x9   :  { %1570 = vmatmul.msk.bf16.vlgmr.msra.gmra.mxu3 %vm366_vm0, %v1618_v21  ;;  %v1586_v22 = vld [vmem:[%s2664_s0 + $0x40] sm:$0xff]  ;;  %v1619_v29 = vld [vmem:[%s2664_s0 + $0x148] sm:$0xff]  ;;  %v1605_v31 = vld [vmem:[%s2664_s0 + $0xd8] sm:$0xff] }
   0xa   :  { %v1587_v30 = vld [vmem:[%s2664_s0 + $0x48] sm:$0xff]  ;;  %v1612_v34 = vld [vmem:[%s2664_s0 + $0x110] sm:$0xff]  ;;  %v1606_v39 = vld [vmem:[%s2664_s0 + $0xe0] sm:$0xff] }
   0xb   :  { %v1620_v37 = vld [vmem:[%s2664_s0 + $0x150] sm:$0xff]  ;;  %v1613_v42 = vld [vmem:[%s2664_s0 + $0x118] sm:$0xff]  ;;  %v1614_v49 = vld [vmem:[%s2664_s0 + $0x120] sm:$0xff] }
   0xc   :  { %v1588_v38 = vld [vmem:[%s2664_s0 + $0x50] sm:$0xff]  ;;  %v1621_v45 = vld [vmem:[%s2664_s0 + $0x158] sm:$0xff]  ;;  %v1622_v52 = vld [vmem:[%s2664_s0 + $0x160] sm:$0xff] }
   0xd   :  { %v1589_v46 = vld [vmem:[%s2664_s0 + $0x58] sm:$0xff]  ;;  %v1590_v53 = vld [vmem:[%s2664_s0 + $0x60] sm:$0xff]  ;;  %v1615_v56 = vld [vmem:[%s2664_s0 + $0x128] sm:$0xff] }
   0xe   :  { %v1623_v59 = vld [vmem:[%s2664_s0 + $0x168] sm:$0xff]  ;;  %v1854_v0 = vld [vmem:[%s2665_s3] ss:$0 sm:$0xff]  ;;  %v1592_v21 = vld [vmem:[%s2664_s0 + $0x70] sm:$0xff] }
   0xf   :  { %v1591_v61 = vld [vmem:[%s2664_s0 + $0x68] sm:$0xff] }
  0x15   :  { %1531 = vmatmul.msk.bf16.gmra.mxu0 %vm366_vm0, %v1579_v3  ;;  %1549 = vmatmul.msk.bf16.gmra.mxu1 %vm366_vm0, %v1597_v4  ;;  %v1616_v3 = vld [vmem:[%s2664_s0 + $0x130] sm:$0xff] }
  0x16   :  { %1560 = vmatmul.msk.bf16.gmra.mxu2 %vm366_vm0, %v1608_v14 }
  0x19   :  { %1571 = vmatmul.msk.bf16.gmra.mxu3 %vm366_vm0, %v1619_v29 }
  0x25   :  { %1532 = vmatmul.msk.bf16.gmra.mxu0 %vm366_vm0, %v1580_v5  ;;  %1550 = vmatmul.msk.bf16.gmra.mxu1 %vm366_vm0, %v1598_v6 }
  0x26   :  { %1561 = vmatmul.msk.bf16.gmra.mxu2 %vm366_vm0, %v1609_v17 }
  0x29   :  { %1572 = vmatmul.msk.bf16.gmra.mxu3 %vm366_vm0, %v1620_v37 }
  0x35   :  { %1533 = vmatmul.msk.bf16.gmra.mxu0 %vm366_vm0, %v1581_v7  ;;  %1551 = vmatmul.msk.bf16.gmra.mxu1 %vm366_vm0, %v1599_v8  ;;  %v1624_v7 = vld [vmem:[%s2664_s0 + $0x170] sm:$0xff] }
  0x36   :  { %1562 = vmatmul.msk.bf16.gmra.mxu2 %vm366_vm0, %v1610_v20 }
  0x39   :  { %1573 = vmatmul.msk.bf16.gmra.mxu3 %vm366_vm0, %v1621_v45 }
  0x45   :  { %1534 = vmatmul.msk.bf16.gmra.mxu0 %vm366_vm0, %v1582_v9  ;;  %1552 = vmatmul.msk.bf16.gmra.mxu1 %vm366_vm0, %v1600_v10 }
  0x46   :  { %1563 = vmatmul.msk.bf16.gmra.mxu2 %vm366_vm0, %v1611_v26 }
  0x49   :  { %1574 = vmatmul.msk.bf16.gmra.mxu3 %vm366_vm0, %v1622_v52 }
  0x55   :  { %1535 = vmatmul.msk.bf16.gmra.mxu0 %vm366_vm0, %v1583_v12  ;;  %1553 = vmatmul.msk.bf16.gmra.mxu1 %vm366_vm0, %v1601_v13 }
  0x56   :  { %1564 = vmatmul.msk.bf16.gmra.mxu2 %vm366_vm0, %v1612_v34 }
  0x59   :  { %1575 = vmatmul.msk.bf16.gmra.mxu3 %vm366_vm0, %v1623_v59 }
  0x65   :  { %1536 = vmatmul.msk.bf16.gmra.mxu0 %vm366_vm0, %v1584_v15  ;;  %1554 = vmatmul.msk.bf16.gmra.mxu1 %vm366_vm0, %v1602_v16 }
  0x66   :  { %1565 = vmatmul.msk.bf16.gmra.mxu2 %vm366_vm0, %v1613_v42 }
  0x69   :  { %1576 = vmatmul.msk.bf16.gmra.mxu3 %vm366_vm0, %v1624_v7 }
  0x75   :  { %1537 = vmatmul.msk.bf16.gmra.mxu0 %vm366_vm0, %v1585_v18  ;;  %1555 = vmatmul.msk.bf16.gmra.mxu1 %vm366_vm0, %v1603_v19 }
  0x76   :  { %1566 = vmatmul.msk.bf16.gmra.mxu2 %vm366_vm0, %v1614_v49 }
  0x82   :  { %v1750_v24 = vpop.f32.mrf.mxu0  ;;  %v1752_v25 = vpop.f32.mrf.mxu1 }
  0x83   :  { %v611_v52 = vadd.f32 %v1854_v0, %v1752_v25  ;;  %v1593_v25 = vld [vmem:[%s2664_s0 + $0x78] sm:$0xff] }
  0x85   :  { %1538 = vmatmul.msk.bf16.gmra.mxu0 %vm366_vm0, %v1586_v22  ;;  %1556 = vmatmul.msk.bf16.gmra.mxu1 %vm366_vm0, %v1604_v23 }
  0x86   :  { %1567 = vmatmul.msk.bf16.gmra.mxu2 %vm366_vm0, %v1615_v56 }
  0x89   :  { %v1844_v60 = vpop.f32.mrf.mxu2 }
  0x8a   :  { %v1759_v27 = vpop.f32.mrf.mxu0  ;;  %v1761_v28 = vpop.f32.mrf.mxu1 }
  0x8b   :  { %v613_v45 = vadd.f32 %v1854_v0, %v1761_v28 }
  0x91   :  { %v1857_v1 = vpop.f32.mrf.mxu2 }
  0x92   :  { %v1774_v32 = vpop.f32.mrf.mxu0  ;;  %v1776_v33 = vpop.f32.mrf.mxu1 }
  0x95   :  { %1539 = vmatmul.msk.bf16.gmra.mxu0 %vm366_vm0, %v1587_v30  ;;  %1557 = vmatmul.msk.bf16.gmra.mxu1 %vm366_vm0, %v1605_v31 }
  0x96   :  { %1568 = vmatmul.msk.bf16.gmra.mxu2 %vm366_vm0, %v1616_v3 }
  0x99   :  { %v1874_v14 = vpop.f32.mrf.mxu2 }
  0x9a   :  { %v1783_v35 = vpop.f32.mrf.mxu0  ;;  %v1785_v36 = vpop.f32.mrf.mxu1 }
  0x9b   :  { %v618_v34 = vadd.f32 %v1854_v0, %v1785_v36  ;;  %v1617_v36 = vld [vmem:[%s2664_s0 + $0x138] sm:$0xff] }
  0xa2   :  { %v1798_v40 = vpop.f32.mrf.mxu0  ;;  %v620_v41 = vpop.f32.mrf.mxu1 }
  0xa3   :  { %v621_v29 = vadd.f32 %v1854_v0, %v620_v41  ;;  %v616_v41 = vadd.f32 %v1854_v0, %v1776_v33  ;;  %v1625_v33 = vld [vmem:[%s2664_s0 + $0x178] sm:$0xff] }
  0xa4   :  { %1577 = vmatmul.msk.bf16.gmra.mxu3 %vm366_vm0, %v1625_v33 }
  0xa5   :  { %1540 = vmatmul.msk.bf16.gmra.mxu0 %vm366_vm0, %v1588_v38  ;;  %1558 = vmatmul.msk.bf16.gmra.mxu1 %vm366_vm0, %v1606_v39  ;;  %v1897_v38 = vpop.f32.mrf.mxu2  ;;  %v800_v42 = vmul.f32 0.01, %v621_v29 }
  0xa6   :  { %1569 = vmatmul.msk.bf16.gmra.mxu2 %vm366_vm0, %v1617_v36 }
  0xa7   :  { %v1924_v28 = vmax.f32 %v621_v29, %v800_v42 }
  0xa9   :  { %2691 = vst [vmem:[#allocation9_spill] sm:$0xff] %v1924_v28 }
  0xaa   :  { %v1805_v43 = vpop.f32.mrf.mxu0  ;;  %v622_v44 = vpop.f32.mrf.mxu1 }
  0xab   :  { %v623_v19 = vadd.f32 %v1854_v0, %v622_v44 }
  0xad   :  { %v801_v37 = vmul.f32 0.01, %v623_v19 }
  0xb2   :  { %v1815_v47 = vpop.f32.mrf.mxu0  ;;  %v625_v48 = vpop.f32.mrf.mxu1 }
  0xb3   :  { %v626_v15 = vadd.f32 %v1854_v0, %v625_v48  ;;  %v1913_v48 = vmax.f32 %v623_v19, %v801_v37 }
  0xb5   :  { %1541 = vmatmul.msk.bf16.gmra.mxu0 %vm366_vm0, %v1589_v46  ;;  %v802_v30 = vmul.f32 0.01, %v626_v15  ;;  %v799_v46 = vmul.f32 0.01, %v618_v34  ;;  %2690 = vst [vmem:[#allocation8_spill] sm:$0xff] %v1913_v48 }
  0xb7   :  { %v1905_v44 = vmax.f32 %v626_v15, %v802_v30  ;;  %v1930_v56 = vmax.f32 %v618_v34, %v799_v46 }
  0xb9   :  { %2689 = vst [vmem:[#allocation7_spill] sm:$0xff] %v1905_v44 }
  0xba   :  { %v1821_v50 = vpop.f32.mrf.mxu0  ;;  %v627_v51 = vpop.f32.mrf.mxu1  ;;  %2692 = vst [vmem:[#allocation10_spill] sm:$0xff] %v1930_v56 }
  0xbb   :  { %v628_v11 = vadd.f32 %v1854_v0, %v627_v51 }
  0xbd   :  { %v803_v20 = vmul.f32 0.01, %v628_v11 }
  0xbf   :  { %v1900_v39 = vmax.f32 %v628_v11, %v803_v20 }
  0xc1   :  { %2688 = vst [vmem:[#allocation6_spill] sm:$0xff] %v1900_v39 }
  0xc2   :  { %v1831_v54 = vpop.f32.mrf.mxu0  ;;  %v630_v55 = vpop.f32.mrf.mxu1 }
  0xc3   :  { %v631_v8 = vadd.f32 %v1854_v0, %v630_v55  ;;  %v1927_v55 = vpop.f32.mrf.mxu2  ;;  %v541_v36 = vadd.f32 %v1854_v0, %v1831_v54  ;;  %v536_v54 = vadd.f32 %v1854_v0, %v1815_v47  ;;  %v531_v47 = vadd.f32 %v1854_v0, %v1798_v40 }
  0xc5   :  { %1542 = vmatmul.msk.bf16.gmra.mxu0 %vm366_vm0, %v1590_v53  ;;  %v804_v16 = vmul.f32 0.01, %v631_v8  ;;  %v798_v53 = vmul.f32 0.01, %v616_v41 }
  0xc7   :  { %v1892_v31 = vmax.f32 %v631_v8, %v804_v16  ;;  %v1933_v59 = vmax.f32 %v616_v41, %v798_v53 }
  0xc9   :  { %2687 = vst [vmem:[#allocation5_spill] sm:$0xff] %v1892_v31 }
  0xca   :  { %v1837_v57 = vpop.f32.mrf.mxu0  ;;  %v632_v58 = vpop.f32.mrf.mxu1  ;;  %2693 = vst [vmem:[#allocation11_spill] sm:$0xff] %v1933_v59 }
  0xcb   :  { %v633_v4 = vadd.f32 %v1854_v0, %v632_v58  ;;  %v797_v58 = vmul.f32 0.01, %v613_v45 }
  0xcd   :  { %v805_v12 = vmul.f32 0.01, %v633_v4 }
  0xcf   :  { %v1886_v22 = vmax.f32 %v633_v4, %v805_v12 }
  0xd1   :  { %2686 = vst [vmem:[#allocation4_spill] sm:$0xff] %v1886_v22 }
  0xd2   :  { %v1849_v62 = vpop.f32.mrf.mxu0  ;;  %v635_v63 = vpop.f32.mrf.mxu1 }
  0xd3   :  { %v636_v2 = vadd.f32 %v1854_v0, %v635_v63  ;;  %v1939_v63 = vmax.f32 %v613_v45, %v797_v58  ;;  %v546_v29 = vadd.f32 %v1854_v0, %v1849_v62  ;;  %v768_v58 = vmul.f32 0.01, %v541_v36 }
  0xd5   :  { %1543 = vmatmul.msk.bf16.gmra.mxu0 %vm366_vm0, %v1591_v61  ;;  %v806_v9 = vmul.f32 0.01, %v636_v2  ;;  %v796_v61 = vmul.f32 0.01, %v611_v52  ;;  %2694 = vst [vmem:[#allocation12_spill] sm:$0xff] %v1939_v63 }
  0xd6   :  { %v770_v45 = vmul.f32 0.01, %v546_v29 }
  0xd7   :  { %v1879_v18 = vmax.f32 %v636_v2, %v806_v9  ;;  %v1944_v4 = vmax.f32 %v611_v52, %v796_v61 }
  0xd8   :  { %v1998_v61 = vmax.f32 %v546_v29, %v770_v45  ;;  %v1595_v29 = vld [vmem:[%s2664_s0 + $0x88] sm:$0xff] }
  0xd9   :  { %2685 = vst [vmem:[#allocation3_spill] sm:$0xff] %v1879_v18 }
  0xda   :  { %v1864_v5 = vpop.f32.mrf.mxu0  ;;  %v637_v6 = vpop.f32.mrf.mxu1  ;;  %2695 = vst [vmem:[#allocation13_spill] sm:$0xff] %v1944_v4 }
  0xdb   :  { %v638_v10 = vadd.f32 %v1854_v0, %v637_v6  ;;  %v1947_v6 = vpop.f32.mrf.mxu2  ;;  %v548_v19 = vadd.f32 %v1854_v0, %v1864_v5  ;;  %v543_v5 = vadd.f32 %v1854_v0, %v1837_v57  ;;  %v538_v57 = vadd.f32 %v1854_v0, %v1821_v50 }
  0xdc   :  { %v533_v50 = vadd.f32 %v1854_v0, %v1805_v43 }
  0xdd   :  { %v807_v13 = vmul.f32 0.01, %v638_v10  ;;  %v771_v62 = vmul.f32 0.01, %v548_v19  ;;  %v769_v52 = vmul.f32 0.01, %v543_v5 }
  0xde   :  { %v765_v43 = vmul.f32 0.01, %v533_v50 }
  0xdf   :  { %v1877_v17 = vmax.f32 %v638_v10, %v807_v13  ;;  %v1991_v33 = vmax.f32 %v548_v19, %v771_v62  ;;  %v526_v19 = vadd.f32 %v1854_v0, %v1774_v32 }
  0xe0   :  { %v2036_v32 = vmax.f32 %v533_v50, %v765_v43 }
  0xe1   :  { %2684 = vst [vmem:[#allocation2_spill] sm:$0xff] %v1877_v17  ;;  %1015 = vmatpush.msrb.mxu3 %v1877_v17  ;;  %v762_v45 = vmul.f32 0.01, %v526_v19 }
  0xe2   :  { %v550_v23 = vpop.f32.mrf.mxu0  ;;  %v1888_v26 = vpop.f32.mrf.mxu1 }
  0xe3   :  { %1016 = vmatpush.msrb.mxu3 %v1879_v18  ;;  %v551_v12 = vadd.f32 %v1854_v0, %v550_v23  ;;  %v1957_v16 = vpop.f32.mrf.mxu2  ;;  %v1594_v23 = vld [vmem:[%s2664_s0 + $0x80] sm:$0xff] }
  0xe5   :  { %1544 = vmatmul.msk.bf16.gmra.mxu0 %vm366_vm0, %v1592_v21  ;;  %1017 = vmatpush.msrb.mxu3 %v1886_v22  ;;  %v772_v30 = vmul.f32 0.01, %v551_v12 }
  0xe7   :  { %1018 = vmatpush.msrb.mxu3 %v1892_v31  ;;  %v1984_v46 = vmax.f32 %v551_v12, %v772_v30  ;;  %v528_v12 = vadd.f32 %v1854_v0, %v1783_v35 }
  0xe9   :  { %1019 = vmatpush.msrb.mxu3 %v1900_v39  ;;  %v763_v62 = vmul.f32 0.01, %v528_v12 }
  0xea   :  { %v552_v49 = vpop.f32.mrf.mxu0  ;;  %v1915_v51 = vpop.f32.mrf.mxu1 }
  0xeb   :  { %1020 = vmatpush.msrb.mxu3 %v1905_v44  ;;  %v553_v10 = vadd.f32 %v1854_v0, %v552_v49  ;;  %v1986_v49 = vpop.f32.mrf.mxu3  ;;  %v1993_v53 = vpop.f32.mrf.mxu2 }
  0xec   :  { %2696 = vst [vmem:[#allocation14_spill] sm:$0xff] %v1986_v49 }
  0xed   :  { %1021 = vmatpush.msrb.mxu3 %v1913_v48  ;;  %v773_v20 = vmul.f32 0.01, %v553_v10 }
  0xef   :  { %1022 = vmatpush.msrb.mxu3 %v1924_v28  ;;  %v1978_v42 = vmax.f32 %v553_v10, %v773_v20  ;;  %v766_v10 = vmul.f32 0.01, %v536_v54  ;;  %v764_v20 = vmul.f32 0.01, %v531_v47 }
  0xf1   :  { %1023 = vmatpush.msrb.mxu3 %v1930_v56  ;;  %v2024_v40 = vmax.f32 %v536_v54, %v766_v10 }
  0xf2   :  { %v555_v2 = vpop.f32.mrf.mxu0  ;;  %v1941_v3 = vpop.f32.mrf.mxu1 }
  0xf3   :  { %1024 = vmatpush.msrb.mxu3 %v1933_v59  ;;  %v556_v7 = vadd.f32 %v1854_v0, %v555_v2  ;;  %v2029_v35 = vpop.f32.mrf.mxu2 }
  0xf5   :  { %1545 = vmatmul.msk.bf16.gmra.mxu0 %vm366_vm0, %v1593_v25  ;;  %1025 = vmatpush.msrb.mxu3 %v1939_v63  ;;  %v774_v13 = vmul.f32 0.01, %v556_v7 }
  0xf7   :  { %1026 = vmatpush.msrb.mxu3 %v1944_v4  ;;  %v1966_v34 = vmax.f32 %v556_v7, %v774_v13  ;;  %v2007_v7 = vmax.f32 %v543_v5, %v769_v52  ;;  %v523_v5 = vadd.f32 %v1854_v0, %v1759_v27  ;;  %v678_v52 = vadd.f32 %v1854_v0, %v1947_v6 }
  0xf8   :  { %v2047_v27 = vmax.f32 %v528_v12, %v763_v62 }
  0xf9   :  { %v761_v54 = vmul.f32 0.01, %v523_v5  ;;  %v823_v10 = vmul.f32 0.01, %v678_v52 }
  0xfa   :  { %v557_v8 = vpop.f32.mrf.mxu0  ;;  %v1952_v9 = vpop.f32.mrf.mxu1 }
  0xfb   :  { %v558_v11 = vadd.f32 %v1854_v0, %v557_v8  ;;  %v767_v8 = vmul.f32 0.01, %v538_v57  ;;  %v2061_v12 = vmax.f32 %v523_v5, %v761_v54  ;;  %v668_v5 = vadd.f32 %v1854_v0, %v1857_v1 }
  0xfc   :  { %v666_v54 = vadd.f32 %v1854_v0, %v1844_v60 }
  0xfd   :  { %v775_v15 = vmul.f32 0.01, %v558_v11  ;;  %v2017_v13 = vmax.f32 %v538_v57, %v767_v8  ;;  %v2042_v57 = vmax.f32 %v531_v47, %v764_v20  ;;  %v673_v47 = vadd.f32 %v1854_v0, %v1897_v38  ;;  %v2063_v20 = vpop.f32.mrf.mxu2 }
  0xfe   :  { %v819_v63 = vmul.f32 0.01, %v668_v5 }
  0xff   :  { %v1961_v21 = vmax.f32 %v558_v11, %v775_v15  ;;  %v2012_v11 = vmax.f32 %v541_v36, %v768_v58  ;;  %v2019_v15 = vpop.f32.mrf.mxu3  ;;  %v521_v36 = vadd.f32 %v1854_v0, %v1750_v24  ;;  %v676_v58 = vadd.f32 %v1854_v0, %v1927_v55  ;;  %v2068_v55 = vld [vmem:[%s2666_s1] sm:$0xff] }
 0x100   :  { %2697 = vst [vmem:[#allocation15_spill] sm:$0xff] %v2019_v15  ;;  %v2052_v24 = vmax.f32 %v526_v19, %v762_v45  ;;  %v671_v19 = vadd.f32 %v1854_v0, %v1874_v14  ;;  %v821_v62 = vmul.f32 0.01, %v673_v47  ;;  %v2078_v45 = vmax.f32 %v678_v52, %v823_v10 }
 0x101   :  { %975 = vmatpush.msrb.mxu1 %v1961_v21  ;;  %v760_v50 = vmul.f32 0.01, %v521_v36  ;;  %958 = vst [vmem:[#allocation1] ss:$2 sm:$0xff] %v2068_v55  ;;  %v818_v10 = vmul.f32 0.01, %v666_v54 }
 0x102   :  { %v1971_v37 = vpop.f32.mrf.mxu0  ;;  %v1973_v41 = vpop.f32.mrf.mxu1  ;;  %v820_v4 = vmul.f32 0.01, %v671_v19  ;;  %v2086_v59 = vmax.f32 %v673_v47, %v821_v62 }
 0x103   :  { %976 = vmatpush.msrb.mxu1 %v1966_v34  ;;  %v2074_v38 = vmax.f32 %v521_v36, %v760_v50 }
 0x104   :  { %v2093_v56 = vmax.f32 %v671_v19, %v820_v4 }
 0x105   :  { %1546 = vmatmul.msk.bf16.gmra.mxu0 %vm366_vm0, %v1594_v23  ;;  %977 = vmatpush.msrb.mxu1 %v1978_v42  ;;  %v2096_v60 = vpop.f32.mrf.mxu2 }
 0x107   :  { %978 = vmatpush.msrb.mxu1 %v1984_v46  ;;  %v2054_v8 = vpop.f32.mrf.mxu3 }
 0x108   :  { %v963_v52 = vld.sshfl [vmem:[#allocation1] sm:$0xff pattern:$0x75316420] }
 0x109   :  { %979 = vmatpush.msrb.mxu1 %v1991_v33 }
 0x10a   :  { %v2000_v25 = vpop.f32.mrf.mxu0  ;;  %v2002_v2 = vpop.f32.mrf.mxu1 }
 0x10b   :  { %980 = vmatpush.msrb.mxu1 %v1998_v61 }
 0x10d   :  { %981 = vmatpush.msrb.mxu1 %v2007_v7  ;;  %v2121_v31 = vpop.f32.mrf.mxu2 }
 0x10f   :  { %982 = vmatpush.msrb.mxu1 %v2012_v11  ;;  %v2091_v1 = vpop.f32.mrf.mxu3 }
 0x111   :  { %983 = vmatpush.msrb.mxu1 %v2017_v13 }
 0x112   :  { %v2031_v30 = vpop.f32.mrf.mxu0  ;;  %v655_v23 = vpop.f32.mrf.mxu1 }
 0x113   :  { %984 = vmatpush.msrb.mxu1 %v2024_v40  ;;  %v656_v19 = vadd.f32 %v1854_v0, %v655_v23  ;;  %v648_v23 = vadd.f32 %v1854_v0, %v1952_v9 }
 0x115   :  { %1547 = vmatmul.msk.bf16.gmra.mxu0 %vm366_vm0, %v1595_v29  ;;  %985 = vmatpush.msrb.mxu1 %v2036_v32  ;;  %v822_v29 = vmul.f32 0.01, %v676_v58  ;;  %v814_v48 = vmul.f32 0.01, %v656_v19 }
 0x117   :  { %986 = vmatpush.msrb.mxu1 %v2042_v57  ;;  %v2083_v14 = vmax.f32 %v676_v58, %v822_v29  ;;  %v2098_v58 = vmax.f32 %v668_v5, %v819_v63  ;;  %v2102_v29 = vmax.f32 %v666_v54, %v818_v10  ;;  %v653_v5 = vadd.f32 %v1854_v0, %v2002_v2  ;;  %v2113_v10 = vpop.f32.mrf.mxu3 }
 0x119   :  { %987 = vmatpush.msrb.mxu1 %v2047_v27 }
 0x11a   :  { %v2058_v6 = vpop.f32.mrf.mxu0  ;;  %v657_v43 = vpop.f32.mrf.mxu1 }
 0x11b   :  { %988 = vmatpush.msrb.mxu1 %v2052_v24  ;;  %v658_v62 = vadd.f32 %v1854_v0, %v657_v43  ;;  %v651_v43 = vadd.f32 %v1854_v0, %v1973_v41  ;;  %v646_v41 = vadd.f32 %v1854_v0, %v1941_v3 }
 0x11d   :  { %989 = vmatpush.msrb.mxu1 %v2061_v12  ;;  %v812_v18 = vmul.f32 0.01, %v651_v43 }
 0x11f   :  { %990 = vmatpush.msrb.mxu1 %v2074_v38 }
 0x120   :  { %991 = vmatmul.f32.vlgmr.msrb.gmra.mxu1 %v963_v52 }
 0x121   :  { %1035 = vmatpush.msra.mxu1 %v2078_v45 }
 0x122   :  { %v2088_v36 = vpop.f32.mrf.mxu0  ;;  %v660_v50 = vpop.f32.mrf.mxu1 }
 0x123   :  { %1036 = vmatpush.msra.mxu1 %v2083_v14  ;;  %v661_v47 = vadd.f32 %v1854_v0, %v660_v50  ;;  %v815_v50 = vmul.f32 0.01, %v658_v62 }
 0x125   :  { %1037 = vmatpush.msra.mxu1 %v2086_v59  ;;  %v816_v52 = vmul.f32 0.01, %v661_v47  ;;  %v2125_v22 = vmax.f32 %v658_v62, %v815_v50  ;;  %v641_v62 = vadd.f32 %v1854_v0, %v1888_v26  ;;  %v810_v50 = vmul.f32 0.01, %v646_v41  ;;  %v2157_v26 = vld [vmem:[%s2666_s1 + $0x8] sm:$0xff] }
 0x126   :  { %960 = vst [vmem:[#allocation1 + $0x10] ss:$2 sm:$0xff] %v2157_v26 }
 0x127   :  { %1038 = vmatpush.msra.mxu1 %v2093_v56  ;;  %v2117_v44 = vmax.f32 %v661_v47, %v816_v52  ;;  %v2132_v47 = vmax.f32 %v656_v19, %v814_v48  ;;  %v643_v52 = vadd.f32 %v1854_v0, %v1915_v51  ;;  %v2145_v48 = vpop.f32.mrf.mxu3  ;;  %v2150_v51 = vpop.f32.mrf.mxu2 }
 0x129   :  { %1039 = vmatpush.msra.mxu1 %v2098_v58  ;;  %v809_v3 = vmul.f32 0.01, %v643_v52 }
 0x12a   :  { %v2106_v28 = vpop.f32.mrf.mxu0  ;;  %v662_v4 = vpop.f32.mrf.mxu1 }
 0x12b   :  { %1040 = vmatpush.msra.mxu1 %v2102_v29  ;;  %v663_v63 = vadd.f32 %v1854_v0, %v662_v4  ;;  %v813_v4 = vmul.f32 0.01, %v653_v5 }
 0x12d   :  { %v817_v54 = vmul.f32 0.01, %v663_v63  ;;  %v2137_v9 = vmax.f32 %v653_v5, %v813_v4  ;;  %v966_v17 = vld.sshfl [vmem:[#allocation1 + $0x18] sm:$0xff pattern:$0x75316420] }
 0x12f   :  { %v2119_v39 = vmax.f32 %v663_v63, %v817_v54  ;;  %v811_v63 = vmul.f32 0.01, %v648_v23  ;;  %v2142_v54 = vmax.f32 %v651_v43, %v812_v18  ;;  %v808_v18 = vmul.f32 0.01, %v641_v62 }
 0x130   :  { %v2159_v43 = vmax.f32 %v646_v41, %v810_v50  ;;  %v1111_v41 = vmul.f32 %v1961_v21, %v1961_v21  ;;  %v1107_v21 = vmul.f32 %v1991_v33, %v1991_v33  ;;  %v1103_v33 = vmul.f32 %v2017_v13, %v2017_v13 }
 0x131   :  { %1041 = vmatpush.msra.mxu1 %v2119_v39  ;;  %v2147_v19 = vmax.f32 %v648_v23, %v811_v63  ;;  %v2163_v23 = vmax.f32 %v643_v52, %v809_v3  ;;  %v2166_v4 = vmax.f32 %v641_v62, %v808_v18  ;;  %v2170_v63 = vpop.f32.mrf.mxu3  ;;  %v2177_v52 = vpop.f32.mrf.mxu2  ;;  %v1110_v62 = vmul.f32 %v1966_v34, %v1966_v34 }
 0x132   :  { %v2128_v2 = vpop.f32.mrf.mxu0  ;;  %v1109_v3 = vmul.f32 %v1978_v42, %v1978_v42  ;;  %v1108_v18 = vmul.f32 %v1984_v46, %v1984_v46  ;;  %v1106_v34 = vmul.f32 %v1998_v61, %v1998_v61  ;;  %v1105_v42 = vmul.f32 %v2007_v7, %v2007_v7 }
 0x133   :  { %1042 = vmatpush.msra.mxu1 %v2117_v44  ;;  %v1104_v46 = vmul.f32 %v2012_v11, %v2012_v11  ;;  %v1102_v61 = vmul.f32 %v2024_v40, %v2024_v40  ;;  %v1101_v7 = vmul.f32 %v2036_v32, %v2036_v32  ;;  %v1100_v11 = vmul.f32 %v2042_v57, %v2042_v57 }
 0x134   :  { %v1099_v13 = vmul.f32 %v2047_v27, %v2047_v27  ;;  %v1098_v40 = vmul.f32 %v2052_v24, %v2052_v24  ;;  %v1159_v57 = vmul.f32 %v2078_v45, %v2078_v45  ;;  %v1158_v24 = vmul.f32 %v2083_v14, %v2083_v14 }
 0x135   :  { %1043 = vmatpush.msra.mxu1 %v2125_v22  ;;  %v1155_v45 = vmul.f32 %v2098_v58, %v2098_v58  ;;  %v1151_v58 = vmul.f32 %v2125_v22, %v2125_v22  ;;  %v1147_v22 = vmul.f32 %v2147_v19, %v2147_v19 }
 0x137   :  { %1044 = vmatpush.msra.mxu1 %v2132_v47 }
 0x139   :  { %1045 = vmatpush.msra.mxu1 %v2137_v9  ;;  %v2189_v15 = vpop.f32.mrf.mxu3 }
 0x13a   :  { %v2152_v5 = vpop.f32.mrf.mxu0 }
 0x13b   :  { %1046 = vmatpush.msra.mxu1 %v2142_v54 }
 0x13d   :  { %1047 = vmatpush.msra.mxu1 %v2147_v19  ;;  %v1145_v19 = vmul.f32 %v2163_v23, %v2163_v23 }
 0x13f   :  { %1048 = vmatpush.msra.mxu1 %v2159_v43 }
 0x141   :  { %1049 = vmatpush.msra.mxu1 %v2163_v23 }
 0x142   :  { %v2174_v50 = vpop.f32.mrf.mxu0 }
 0x143   :  { %1050 = vmatpush.msra.mxu1 %v2166_v4 }
 0x144   :  { %1051 = vmatmul.f32.vlgmr.msra.gmra.mxu1 %v966_v17  ;;  %v2193_v17 = vpop.f32.mrf.mxu2 }
 0x145   :  { %1209 = vmatpush.msrb.mxu1 %v1111_v41 }
 0x147   :  { %1210 = vmatpush.msrb.mxu1 %v1110_v62  ;;  %v2205_v62 = vpop.f32.mrf.mxu3 }
 0x149   :  { %1211 = vmatpush.msrb.mxu1 %v1109_v3 }
 0x14a   :  { %v2187_v49 = vpop.f32.mrf.mxu0 }
 0x14b   :  { %1212 = vmatpush.msrb.mxu1 %v1108_v18 }
 0x14c   :  { %v2209_v3 = vpop.f32.mrf.mxu2 }
 0x14d   :  { %1213 = vmatpush.msrb.mxu1 %v1107_v21  ;;  %v1097_v21 = vmul.f32 %v2061_v12, %v2061_v12  ;;  %v1157_v12 = vmul.f32 %v2086_v59, %v2086_v59  ;;  %v1153_v59 = vmul.f32 %v2119_v39, %v2119_v39 }
 0x14f   :  { %1214 = vmatpush.msrb.mxu1 %v1106_v34  ;;  %v2219_v32 = vpop.f32.mrf.mxu3  ;;  %v1096_v34 = vmul.f32 %v2074_v38, %v2074_v38  ;;  %v1156_v38 = vmul.f32 %v2093_v56, %v2093_v56  ;;  %v1152_v56 = vmul.f32 %v2117_v44, %v2117_v44  ;;  %v1148_v44 = vmul.f32 %v2142_v54, %v2142_v54 }
 0x151   :  { %1215 = vmatpush.msrb.mxu1 %v1105_v42 }
 0x152   :  { %v2201_v41 = vpop.f32.mrf.mxu0 }
 0x153   :  { %1216 = vmatpush.msrb.mxu1 %v1104_v46 }
 0x154   :  { %v2225_v27 = vpop.f32.mrf.mxu2 }
 0x155   :  { %1217 = vmatpush.msrb.mxu1 %v1103_v33 }
 0x157   :  { %1218 = vmatpush.msrb.mxu1 %v1102_v61  ;;  %v2235_v46 = vpop.f32.mrf.mxu3  ;;  %v1154_v61 = vmul.f32 %v2102_v29, %v2102_v29  ;;  %v1149_v29 = vmul.f32 %v2137_v9, %v2137_v9 }
 0x159   :  { %1219 = vmatpush.msrb.mxu1 %v1101_v7  ;;  %v1150_v7 = vmul.f32 %v2132_v47, %v2132_v47  ;;  %v1146_v47 = vmul.f32 %v2159_v43, %v2159_v43 }
 0x15a   :  { %v587_v18 = vpop.f32.mrf.mxu0 }
 0x15b   :  { %1220 = vmatpush.msrb.mxu1 %v1100_v11 }
 0x15c   :  { %v2239_v14 = vpop.f32.mrf.mxu2 }
 0x15d   :  { %1221 = vmatpush.msrb.mxu1 %v1099_v13 }
 0x15f   :  { %1222 = vmatpush.msrb.mxu1 %v1098_v40  ;;  %v2249_v13 = vpop.f32.mrf.mxu3 }
 0x161   :  { %1223 = vmatpush.msrb.mxu1 %v1097_v21 }
 0x162   :  { %v590_v42 = vpop.f32.mrf.mxu0 }
 0x163   :  { %1224 = vmatpush.msrb.mxu1 %v1096_v34 }
 0x164   :  { %v2253_v39 = vpop.f32.mrf.mxu2 }
 0x165   :  { %1269 = vmatpush.msra.mxu1 %v1159_v57  ;;  %v591_v57 = vadd.f32 %v1854_v0, %v590_v42  ;;  %v586_v42 = vadd.f32 %v1854_v0, %v2201_v41 }
 0x167   :  { %1270 = vmatpush.msra.mxu1 %v1158_v24  ;;  %v786_v41 = vmul.f32 0.01, %v586_v42 }
 0x169   :  { %1271 = vmatpush.msra.mxu1 %v1157_v12  ;;  %v2265_v12 = vpop.f32.mrf.mxu3 }
 0x16a   :  { %v592_v33 = vpop.f32.mrf.mxu0 }
 0x16b   :  { %1272 = vmatpush.msra.mxu1 %v1156_v38  ;;  %v593_v34 = vadd.f32 %v1854_v0, %v592_v33  ;;  %v588_v38 = vadd.f32 %v1854_v0, %v587_v18  ;;  %v1144_v33 = vmul.f32 %v2166_v4, %v2166_v4  ;;  %v583_v18 = vadd.f32 %v1854_v0, %v2187_v49 }
 0x16c   :  { %v581_v4 = vadd.f32 %v1854_v0, %v2174_v50  ;;  %v2303_v50 = vmax.f32 %v586_v42, %v786_v41  ;;  %v561_v41 = vadd.f32 %v1854_v0, %v1971_v37 }
 0x16d   :  { %1273 = vmatpush.msra.mxu1 %v1155_v45  ;;  %v789_v45 = vmul.f32 0.01, %v593_v34 }
 0x16f   :  { %1274 = vmatpush.msra.mxu1 %v1154_v61  ;;  %v2272_v61 = vpop.f32.mrf.mxu2 }
 0x171   :  { %1275 = vmatpush.msra.mxu1 %v1153_v59  ;;  %v788_v59 = vmul.f32 0.01, %v591_v57 }
 0x172   :  { %v595_v11 = vpop.f32.mrf.mxu0 }
 0x173   :  { %1276 = vmatpush.msra.mxu1 %v1152_v56  ;;  %v596_v40 = vadd.f32 %v1854_v0, %v595_v11  ;;  %v2291_v11 = vmax.f32 %v591_v57, %v788_v59 }
 0x175   :  { %1277 = vmatpush.msra.mxu1 %v1151_v58  ;;  %v790_v24 = vmul.f32 0.01, %v596_v40  ;;  %v787_v58 = vmul.f32 0.01, %v588_v38 }
 0x177   :  { %1278 = vmatpush.msra.mxu1 %v1150_v7  ;;  %v2279_v56 = vmax.f32 %v596_v40, %v790_v24  ;;  %v2286_v7 = vmax.f32 %v593_v34, %v789_v45  ;;  %v2296_v49 = vmax.f32 %v588_v38, %v787_v58  ;;  %v576_v40 = vadd.f32 %v1854_v0, %v2128_v2 }
 0x178   :  { %v571_v24 = vadd.f32 %v1854_v0, %v2088_v36  ;;  %v566_v45 = vadd.f32 %v1854_v0, %v2031_v30 }
 0x179   :  { %1279 = vmatpush.msra.mxu1 %v1149_v29  ;;  %v578_v29 = vadd.f32 %v1854_v0, %v2152_v5  ;;  %v573_v5 = vadd.f32 %v1854_v0, %v2106_v28 }
 0x17a   :  { %v597_v21 = vpop.f32.mrf.mxu0  ;;  %v778_v30 = vmul.f32 0.01, %v566_v45 }
 0x17b   :  { %1280 = vmatpush.msra.mxu1 %v1148_v44  ;;  %v598_v9 = vadd.f32 %v1854_v0, %v597_v21  ;;  %v785_v44 = vmul.f32 0.01, %v583_v18  ;;  %v715_v21 = vpop.f32.mrf.mxu2  ;;  %v781_v38 = vmul.f32 0.01, %v573_v5 }
 0x17c   :  { %v2342_v37 = vmax.f32 %v566_v45, %v778_v30 }
 0x17d   :  { %1281 = vmatpush.msra.mxu1 %v1147_v22  ;;  %v791_v54 = vmul.f32 0.01, %v598_v9  ;;  %v2298_v22 = vpop.f32.mrf.mxu3  ;;  %v2308_v57 = vmax.f32 %v583_v18, %v785_v44  ;;  %v563_v18 = vadd.f32 %v1854_v0, %v2000_v25 }
 0x17e   :  { %2699 = vst [vmem:[#allocation17_spill] sm:$0xff] %v2342_v37 }
 0x17f   :  { %1282 = vmatpush.msra.mxu1 %v1146_v47  ;;  %v2270_v43 = vmax.f32 %v598_v9, %v791_v54  ;;  %v784_v47 = vmul.f32 0.01, %v581_v4  ;;  %v783_v9 = vmul.f32 0.01, %v578_v29  ;;  %v782_v54 = vmul.f32 0.01, %v576_v40 }
 0x181   :  { %1283 = vmatpush.msra.mxu1 %v1145_v19  ;;  %995 = vmatpush.msrb.mxu2 %v2270_v43  ;;  %v2313_v2 = vmax.f32 %v581_v4, %v784_v47  ;;  %v568_v19 = vadd.f32 %v1854_v0, %v2058_v6  ;;  %v2318_v28 = vmax.f32 %v578_v29, %v783_v9  ;;  %v776_v47 = vmul.f32 0.01, %v561_v41 }
 0x182   :  { %v2281_v23 = vpop.f32.mrf.mxu0  ;;  %v2323_v36 = vmax.f32 %v576_v40, %v782_v54  ;;  %v2328_v6 = vmax.f32 %v573_v5, %v781_v38  ;;  %v777_v40 = vmul.f32 0.01, %v563_v18  ;;  %v716_v5 = vadd.f32 %v1854_v0, %v715_v21 }
 0x183   :  { %1284 = vmatpush.msra.mxu1 %v1144_v33  ;;  %996 = vmatpush.msrb.mxu2 %v2279_v56  ;;  %v780_v33 = vmul.f32 0.01, %v571_v24  ;;  %v779_v58 = vmul.f32 0.01, %v568_v19  ;;  %v717_v4 = vpop.f32.mrf.mxu2  ;;  %v2353_v45 = vmax.f32 %v561_v41, %v776_v47  ;;  %v601_v30 = vadd.f32 %v1854_v0, %v2281_v23 }
 0x184   :  { %v718_v44 = vadd.f32 %v1854_v0, %v717_v4 }
 0x185   :  { %997 = vmatpush.msrb.mxu2 %v2286_v7  ;;  %v755_v42 = vpop.f32.mrf.mxu3  ;;  %v2333_v29 = vmax.f32 %v571_v24, %v780_v33  ;;  %v2337_v25 = vmax.f32 %v568_v19, %v779_v58  ;;  %v713_v24 = vadd.f32 %v1854_v0, %v2272_v61  ;;  %v2349_v19 = vmax.f32 %v563_v18, %v777_v40 }
 0x186   :  { %v839_v54 = vmul.f32 0.01, %v718_v44  ;;  %v838_v58 = vmul.f32 0.01, %v716_v5  ;;  %v708_v61 = vadd.f32 %v1854_v0, %v2239_v14  ;;  %v706_v14 = vadd.f32 %v1854_v0, %v2225_v27 }
 0x187   :  { %998 = vmatpush.msrb.mxu2 %v2291_v11  ;;  %2698 = vst [vmem:[#allocation16_spill] sm:$0xff] %v2337_v25 }
 0x188   :  { %2700 = vst [vmem:[#allocation18_spill] sm:$0xff] %v2349_v19  ;;  %v2360_v18 = vmax.f32 %v718_v44, %v839_v54  ;;  %v2369_v47 = vmax.f32 %v716_v5, %v838_v58  ;;  %v954_v44 = vld [vmem:[%s2666_s1 + $0x10] sm:$0xff]  ;;  %v835_v54 = vmul.f32 0.01, %v708_v61  ;;  %v701_v58 = vadd.f32 %v1854_v0, %v2193_v17 }
 0x189   :  { %999 = vmatpush.msrb.mxu2 %v2296_v49  ;;  %962 = vst [vmem:[#allocation1 + $0x20] ss:$2 sm:$0xff] %v954_v44  ;;  %v748_v17 = vadd.f32 %v1854_v0, %v2249_v13  ;;  %v746_v13 = vadd.f32 %v1854_v0, %v2235_v46 }
 0x18a   :  { %v602_v34 = vpop.f32.mrf.mxu0 }
 0x18b   :  { %1000 = vmatpush.msrb.mxu2 %v2303_v50  ;;  %v603_v33 = vadd.f32 %v1854_v0, %v602_v34 }
 0x18d   :  { %1001 = vmatpush.msrb.mxu2 %v2308_v57  ;;  %v757_v21 = vpop.f32.mrf.mxu3 }
 0x18e   :  { %v758_v40 = vadd.f32 %v1854_v0, %v757_v21  ;;  %v792_v21 = vmul.f32 0.01, %v601_v30 }
 0x18f   :  { %1002 = vmatpush.msrb.mxu2 %v2313_v2 }
 0x190   :  { %v855_v5 = vmul.f32 0.01, %v758_v40  ;;  %v2430_v46 = vld.sshfl [vmem:[#allocation1 + $0x20] sm:$0xff pattern:$0x75316420] }
 0x191   :  { %1003 = vmatpush.msrb.mxu2 %v2318_v28 }
 0x192   :  { %v605_v59 = vpop.f32.mrf.mxu0 }
 0x193   :  { %1004 = vmatpush.msrb.mxu2 %v2323_v36  ;;  %v606_v9 = vadd.f32 %v1854_v0, %v605_v59  ;;  %v711_v59 = vadd.f32 %v1854_v0, %v2253_v39  ;;  %v793_v39 = vmul.f32 0.01, %v603_v33 }
 0x195   :  { %1005 = vmatpush.msrb.mxu2 %v2328_v6  ;;  %v794_v34 = vmul.f32 0.01, %v606_v9  ;;  %v836_v23 = vmul.f32 0.01, %v711_v59 }
 0x197   :  { %1006 = vmatpush.msrb.mxu2 %v2333_v29 }
 0x199   :  { %1007 = vmatpush.msrb.mxu2 %v2337_v25 }
 0x19a   :  { %v607_v38 = vpop.f32.mrf.mxu0 }
 0x19b   :  { %v608_v4 = vadd.f32 %v1854_v0, %v607_v38  ;;  %1008 = vmatpush.msrb.mxu2 %v2342_v37  ;;  %v837_v38 = vmul.f32 0.01, %v713_v24  ;;  %v964_v37 = vld.sshfl [vmem:[#allocation1 + $0x8] sm:$0xff pattern:$0x75316420] }
 0x19c   :  { %1192 = vst [vmem:[#allocation1] ss:$2 sm:$0xff] %v2068_v55  ;;  %v703_v55 = vadd.f32 %v1854_v0, %v2209_v3  ;;  %v2392_v3 = vmax.f32 %v711_v59, %v836_v23  ;;  %v832_v23 = vmul.f32 0.01, %v701_v58 }
 0x19d   :  { %v795_v25 = vmul.f32 0.01, %v608_v4  ;;  %1009 = vmatpush.msrb.mxu2 %v2349_v19  ;;  %v756_v19 = vadd.f32 %v1854_v0, %v755_v42  ;;  %v2381_v27 = vmax.f32 %v713_v24, %v837_v38  ;;  %v753_v42 = vadd.f32 %v1854_v0, %v2298_v22 }
 0x19e   :  { %v751_v24 = vadd.f32 %v1854_v0, %v2265_v12  ;;  %v2404_v38 = vmax.f32 %v708_v61, %v835_v54  ;;  %v696_v12 = vadd.f32 %v1854_v0, %v2150_v51  ;;  %v693_v61 = vadd.f32 %v1854_v0, %v2121_v31 }
 0x19f   :  { %1010 = vmatpush.msrb.mxu2 %v2353_v45  ;;  %v2364_v41 = vmax.f32 %v608_v4, %v795_v25  ;;  %v2377_v25 = vmax.f32 %v606_v9, %v794_v34  ;;  %v965_v4 = vld.sshfl [vmem:[#allocation1 + $0x10] sm:$0xff pattern:$0x75316420]  ;;  %v2389_v9 = vmax.f32 %v603_v33, %v793_v39  ;;  %v854_v22 = vmul.f32 0.01, %v756_v19 }
 0x1a0   :  { %1011 = vmatmul.f32.vlgmr.msrb.gmra.mxu2 %v964_v37  ;;  %1194 = vst [vmem:[#allocation1 + $0x10] ss:$2 sm:$0xff] %v2157_v26  ;;  %v834_v37 = vmul.f32 0.01, %v706_v14  ;;  %v698_v34 = vadd.f32 %v1854_v0, %v2177_v52  ;;  %v2402_v33 = vmax.f32 %v601_v30, %v792_v21  ;;  %v833_v26 = vmul.f32 0.01, %v703_v55 }
 0x1a1   :  { %1055 = vmatpush.msra.mxu2 %v2360_v18  ;;  %1027 = vmatpush.msrb.mxu3 %v2364_v41  ;;  %v853_v59 = vmul.f32 0.01, %v753_v42  ;;  %v2406_v39 = vmax.f32 %v758_v40, %v855_v5  ;;  %v852_v30 = vmul.f32 0.01, %v751_v24  ;;  %v2416_v21 = vmax.f32 %v756_v19, %v854_v22 }
 0x1a2   :  { %v2412_v52 = vmax.f32 %v706_v14, %v834_v37  ;;  %v831_v40 = vmul.f32 0.01, %v698_v34  ;;  %v851_v51 = vmul.f32 0.01, %v748_v17  ;;  %v2422_v54 = vmax.f32 %v703_v55, %v833_v26 }
 0x1a3   :  { %1056 = vmatpush.msra.mxu2 %v2369_v47  ;;  %1028 = vmatpush.msrb.mxu3 %v2377_v25  ;;  %v743_v14 = vadd.f32 %v1854_v0, %v2219_v32  ;;  %v2426_v5 = vmax.f32 %v753_v42, %v853_v59  ;;  %v2432_v19 = vld.sshfl [vmem:[#allocation1 + $0x28] sm:$0xff pattern:$0x75316420]  ;;  %v691_v31 = vadd.f32 %v1854_v0, %v2096_v60  ;;  %v830_v37 = vmul.f32 0.01, %v696_v12 }
 0x1a4   :  { %1196 = vst [vmem:[#allocation1 + $0x20] ss:$2 sm:$0xff] %v954_v44  ;;  %v2436_v55 = vmax.f32 %v701_v58, %v832_v23  ;;  %v741_v32 = vadd.f32 %v1854_v0, %v2205_v62  ;;  %v850_v42 = vmul.f32 0.01, %v746_v13  ;;  %v688_v22 = vadd.f32 %v1854_v0, %v2063_v20 }
 0x1a5   :  { %1057 = vmatpush.msra.mxu2 %v2381_v27  ;;  %1029 = vmatpush.msrb.mxu3 %v2389_v9  ;;  %v829_v26 = vmul.f32 0.01, %v693_v61  ;;  %v2446_v59 = vmax.f32 %v698_v34, %v831_v40  ;;  %v738_v60 = vadd.f32 %v1854_v0, %v2189_v15  ;;  %v849_v44 = vmul.f32 0.01, %v743_v14 }
 0x1a6   :  { %v2450_v58 = vmax.f32 %v748_v17, %v851_v51  ;;  %v686_v62 = vadd.f32 %v1854_v0, %v2029_v35  ;;  %v2456_v23 = vmax.f32 %v696_v12, %v830_v37  ;;  %v736_v20 = vadd.f32 %v1854_v0, %v2170_v63  ;;  %v1631_v63 = vld [vmem:[%s2665_s3] ss:$0 sm:$0xff] }
 0x1a7   :  { %1058 = vmatpush.msra.mxu2 %v2392_v3  ;;  %1030 = vmatpush.msrb.mxu3 %v2402_v33  ;;  %v848_v34 = vmul.f32 0.01, %v741_v32  ;;  %v683_v15 = vadd.f32 %v1854_v0, %v1993_v53  ;;  %v827_v17 = vmul.f32 0.01, %v688_v22  ;;  %v2466_v40 = vmax.f32 %v693_v61, %v829_v26 }
 0x1a8   :  { %1031 = vmatmul.f32.vlgmr.msrb.gmra.mxu3 %v965_v4  ;;  %v2440_v4 = vmax.f32 %v751_v24, %v852_v30  ;;  %v828_v24 = vmul.f32 0.01, %v691_v31  ;;  %v2460_v30 = vmax.f32 %v746_v13, %v850_v42  ;;  %v733_v35 = vadd.f32 %v1854_v0, %v2145_v48 }
 0x1a9   :  { %1059 = vmatpush.msra.mxu2 %v2404_v38  ;;  %1075 = vmatpush.msra.mxu3 %v2406_v39  ;;  %v847_v12 = vmul.f32 0.01, %v738_v60  ;;  %v2470_v51 = vmax.f32 %v743_v14, %v849_v44  ;;  %v681_v13 = vadd.f32 %v1631_v63, %v1957_v16  ;;  %v826_v53 = vmul.f32 0.01, %v686_v62 }
 0x1aa   :  { %2701 = vst [vmem:[#allocation19_spill] sm:$0xff] %v2460_v30  ;;  %v2478_v37 = vmax.f32 %v691_v31, %v828_v24  ;;  %v731_v61 = vadd.f32 %v1631_v63, %v2113_v10  ;;  %v846_v42 = vmul.f32 0.01, %v736_v20  ;;  %v2481_v0 = vmax.f32 %v741_v32, %v848_v34 }
 0x1ab   :  { %1060 = vmatpush.msra.mxu2 %v2412_v52  ;;  %1076 = vmatpush.msra.mxu3 %v2416_v21  ;;  %v825_v48 = vmul.f32 0.01, %v683_v15  ;;  %v2485_v14 = vmax.f32 %v688_v22, %v827_v17  ;;  %v728_v26 = vadd.f32 %v1631_v63, %v2091_v1  ;;  %v845_v44 = vmul.f32 0.01, %v733_v35  ;;  %v2702_v22 = vld [vmem:[#allocation15_spill] sm:$0xff] }
 0x1ac   :  { %v824_v16 = vmul.f32 0.01, %v681_v13  ;;  %v2492_v10 = vmax.f32 %v686_v62, %v826_v53  ;;  %v726_v31 = vadd.f32 %v1631_v63, %v2054_v8  ;;  %v844_v32 = vmul.f32 0.01, %v731_v61  ;;  %v2703_v8 = vld [vmem:[#allocation14_spill] sm:$0xff] }
 0x1ad   :  { %1061 = vmatpush.msra.mxu2 %v2422_v54  ;;  %1077 = vmatpush.msra.mxu3 %v2426_v5  ;;  %v2495_v24 = vmax.f32 %v736_v20, %v846_v42  ;;  %v2499_v1 = vmax.f32 %v683_v15, %v825_v48  ;;  %v843_v34 = vmul.f32 0.01, %v728_v26  ;;  %v2502_v17 = vmax.f32 %v733_v35, %v845_v44  ;;  %v2704_v44 = vld [vmem:[#allocation2_spill] sm:$0xff] }
 0x1ae   :  { %v2506_v62 = vmax.f32 %v681_v13, %v824_v16  ;;  %v721_v20 = vadd.f32 %v1631_v63, %v2703_v8  ;;  %v2509_v53 = vmax.f32 %v731_v61, %v844_v32  ;;  %v1127_v15 = vmul.f32 %v2270_v43, %v2270_v43  ;;  %v2706_v32 = vld [vmem:[#allocation4_spill] sm:$0xff] }
 0x1af   :  { %1062 = vmatpush.msra.mxu2 %v2436_v55  ;;  %1078 = vmatpush.msra.mxu3 %v2440_v4  ;;  %v2515_v42 = vmax.f32 %v728_v26, %v843_v34  ;;  %v1125_v43 = vmul.f32 %v2286_v7, %v2286_v7  ;;  %v1124_v26 = vmul.f32 %v2291_v11, %v2291_v11  ;;  %v2705_v7 = vld [vmem:[#allocation3_spill] sm:$0xff] }
 0x1b0   :  { %v840_v13 = vmul.f32 0.01, %v721_v20  ;;  %v1143_v16 = vmul.f32 %v2704_v44, %v2704_v44  ;;  %v1122_v11 = vmul.f32 %v2303_v50, %v2303_v50  ;;  %v1120_v8 = vmul.f32 %v2313_v2, %v2313_v2  ;;  %v2708_v50 = vld [vmem:[#allocation6_spill] sm:$0xff]  ;;  %v2713_v44 = vld [vmem:[#allocation16_spill] sm:$0xff] }
 0x1b1   :  { %1063 = vmatpush.msra.mxu2 %v2446_v59  ;;  %1079 = vmatpush.msra.mxu3 %v2450_v58 }
 0x1b3   :  { %1064 = vmatpush.msra.mxu2 %v2456_v23  ;;  %1080 = vmatpush.msra.mxu3 %v2460_v30  ;;  %v2488_v30 = vmax.f32 %v738_v60, %v847_v12  ;;  %v723_v60 = vadd.f32 %v1631_v63, %v2702_v22  ;;  %v842_v12 = vmul.f32 0.01, %v726_v31  ;;  %v1126_v63 = vmul.f32 %v2279_v56, %v2279_v56 }
 0x1b4   :  { %v2532_v56 = vmax.f32 %v721_v20, %v840_v13  ;;  %v1141_v22 = vmul.f32 %v2706_v32, %v2706_v32  ;;  %v1139_v20 = vmul.f32 %v2708_v50, %v2708_v50  ;;  %v2711_v13 = vld [vmem:[#allocation9_spill] sm:$0xff]  ;;  %v2717_v32 = vld [vmem:[#allocation18_spill] sm:$0xff]  ;;  %v1175_v50 = vmul.f32 %v2360_v18, %v2360_v18 }
 0x1b5   :  { %1065 = vmatpush.msra.mxu2 %v2466_v40  ;;  %1081 = vmatpush.msra.mxu3 %v2470_v51  ;;  %v841_v35 = vmul.f32 0.01, %v723_v60  ;;  %v2521_v61 = vmax.f32 %v726_v31, %v842_v12  ;;  %v1142_v31 = vmul.f32 %v2705_v7, %v2705_v7  ;;  %v2709_v12 = vld [vmem:[#allocation7_spill] sm:$0xff]  ;;  %v2715_v7 = vld [vmem:[#allocation17_spill] sm:$0xff]  ;;  %v1129_v18 = vmul.f32 %v2389_v9, %v2389_v9 }
 0x1b6   :  { %v1170_v9 = vmul.f32 %v2412_v52, %v2412_v52  ;;  %v1188_v52 = vmul.f32 %v2440_v4, %v2440_v4  ;;  %v1185_v4 = vmul.f32 %v2470_v51, %v2470_v51  ;;  %v1182_v51 = vmul.f32 %v2495_v24, %v2495_v24 }
 0x1b7   :  { %1066 = vmatpush.msra.mxu2 %v2478_v37  ;;  %1082 = vmatpush.msra.mxu3 %v2481_v0  ;;  %v2527_v48 = vmax.f32 %v723_v60, %v841_v35  ;;  %v1121_v60 = vmul.f32 %v2308_v57, %v2308_v57  ;;  %v1138_v57 = vmul.f32 %v2709_v12, %v2709_v12  ;;  %v2710_v35 = vld [vmem:[#allocation8_spill] sm:$0xff] }
 0x1b8   :  { %v1137_v2 = vmul.f32 %v2710_v35, %v2710_v35  ;;  %v1174_v12 = vmul.f32 %v2369_v47, %v2369_v47  ;;  %v1128_v47 = vmul.f32 %v2402_v33, %v2402_v33  ;;  %v1199_v35 = vld.sshfl [vmem:[#allocation1 + $0x10] sm:$0xff pattern:$0x75316420]  ;;  %v1169_v33 = vmul.f32 %v2422_v54, %v2422_v54 }
 0x1b9   :  { %1067 = vmatpush.msra.mxu2 %v2485_v14  ;;  %1083 = vmatpush.msra.mxu3 %v2488_v30  ;;  %v1166_v54 = vmul.f32 %v2456_v23, %v2456_v23  ;;  %v1163_v23 = vmul.f32 %v2485_v14, %v2485_v14  ;;  %v1180_v14 = vmul.f32 %v2509_v53, %v2509_v53 }
 0x1bb   :  { %1068 = vmatpush.msra.mxu2 %v2492_v10  ;;  %1084 = vmatpush.msra.mxu3 %v2495_v24  ;;  %v1179_v24 = vmul.f32 %v2515_v42, %v2515_v42 }
 0x1bd   :  { %1069 = vmatpush.msra.mxu2 %v2499_v1  ;;  %1085 = vmatpush.msra.mxu3 %v2502_v17 }
 0x1bf   :  { %1070 = vmatpush.msra.mxu2 %v2506_v62  ;;  %1086 = vmatpush.msra.mxu3 %v2509_v53  ;;  %v1202_v53 = vld.sshfl [vmem:[#allocation1 + $0x28] sm:$0xff pattern:$0x75316420] }
 0x1c0   :  { %1071 = vmatmul.f32.vlgmr.msra.gmra.mxu2 %v2430_v46  ;;  %v1123_v46 = vmul.f32 %v2296_v49, %v2296_v49  ;;  %v2707_v49 = vld [vmem:[#allocation5_spill] sm:$0xff] }
 0x1c1   :  { %1229 = vmatpush.msrb.mxu2 %v1127_v15  ;;  %1087 = vmatpush.msra.mxu3 %v2515_v42  ;;  %v1140_v34 = vmul.f32 %v2707_v49, %v2707_v49  ;;  %v1118_v15 = vmul.f32 %v2323_v36, %v2323_v36  ;;  %v2718_v49 = vld [vmem:[#allocation13_spill] sm:$0xff] }
 0x1c3   :  { %1230 = vmatpush.msrb.mxu2 %v1126_v63  ;;  %1088 = vmatpush.msra.mxu3 %v2521_v61  ;;  %v1117_v63 = vmul.f32 %v2328_v6, %v2328_v6 }
 0x1c5   :  { %1231 = vmatpush.msrb.mxu2 %v1125_v43  ;;  %1089 = vmatpush.msra.mxu3 %v2527_v48  ;;  %v1116_v43 = vmul.f32 %v2333_v29, %v2333_v29 }
 0x1c7   :  { %1232 = vmatpush.msrb.mxu2 %v1124_v26  ;;  %1090 = vmatpush.msra.mxu3 %v2532_v56  ;;  %v2712_v26 = vld [vmem:[#allocation10_spill] sm:$0xff] }
 0x1c8   :  { %1091 = vmatmul.f32.vlgmr.msra.gmra.mxu3 %v2432_v19  ;;  %v1119_v19 = vmul.f32 %v2318_v28, %v2318_v28  ;;  %v1136_v28 = vmul.f32 %v2711_v13, %v2711_v13  ;;  %v1135_v36 = vmul.f32 %v2712_v26, %v2712_v26  ;;  %v1183_v13 = vmul.f32 %v2488_v30, %v2488_v30 }
 0x1c9   :  { %1233 = vmatpush.msrb.mxu2 %v1123_v46  ;;  %1249 = vmatpush.msrb.mxu3 %v1143_v16  ;;  %v1115_v16 = vmul.f32 %v2713_v44, %v2713_v44  ;;  %v2714_v46 = vld [vmem:[#allocation11_spill] sm:$0xff]  ;;  %v1160_v30 = vmul.f32 %v2506_v62, %v2506_v62  ;;  %v1176_v62 = vmul.f32 %v2532_v56, %v2532_v56 }
 0x1ca   :  { %v1134_v6 = vmul.f32 %v2714_v46, %v2714_v46 }
 0x1cb   :  { %1234 = vmatpush.msrb.mxu2 %v1122_v11  ;;  %1250 = vmatpush.msrb.mxu3 %v1142_v31  ;;  %v1114_v31 = vmul.f32 %v2715_v7, %v2715_v7  ;;  %v2716_v11 = vld [vmem:[#allocation12_spill] sm:$0xff] }
 0x1cc   :  { %v1133_v29 = vmul.f32 %v2716_v11, %v2716_v11 }
 0x1cd   :  { %1235 = vmatpush.msrb.mxu2 %v1121_v60  ;;  %1251 = vmatpush.msrb.mxu3 %v1141_v22  ;;  %v1113_v22 = vmul.f32 %v2717_v32, %v2717_v32  ;;  %v1197_v60 = vld.sshfl [vmem:[#allocation1] sm:$0xff pattern:$0x75316420] }
 0x1ce   :  { %1225 = vmatmul.f32.vlgmr.msrb.gmra.mxu1 %v1197_v60 }
 0x1cf   :  { %1236 = vmatpush.msrb.mxu2 %v1120_v8  ;;  %1252 = vmatpush.msrb.mxu3 %v1140_v34  ;;  %v1132_v34 = vmul.f32 %v2718_v49, %v2718_v49  ;;  %v1112_v8 = vmul.f32 %v2353_v45, %v2353_v45  ;;  %v1173_v45 = vmul.f32 %v2381_v27, %v2381_v27 }
 0x1d0   :  { %v1171_v27 = vmul.f32 %v2404_v38, %v2404_v38  ;;  %v1189_v38 = vmul.f32 %v2426_v5, %v2426_v5  ;;  %v2719_v5 = vld [vmem:[#allocation19_spill] sm:$0xff] }
 0x1d1   :  { %1237 = vmatpush.msrb.mxu2 %v1119_v19  ;;  %1253 = vmatpush.msrb.mxu3 %v1139_v20  ;;  %v1198_v20 = vld.sshfl [vmem:[#allocation1 + $0x8] sm:$0xff pattern:$0x75316420]  ;;  %v1131_v19 = vmul.f32 %v2364_v41, %v2364_v41  ;;  %v1172_v41 = vmul.f32 %v2392_v3, %v2392_v3  ;;  %v1190_v3 = vmul.f32 %v2416_v21, %v2416_v21 }
 0x1d2   :  { %v1167_v21 = vmul.f32 %v2446_v59, %v2446_v59  ;;  %v1164_v59 = vmul.f32 %v2478_v37, %v2478_v37  ;;  %v1161_v37 = vmul.f32 %v2499_v1, %v2499_v1  ;;  %v1178_v1 = vmul.f32 %v2521_v61, %v2521_v61 }
 0x1d3   :  { %1238 = vmatpush.msrb.mxu2 %v1118_v15  ;;  %1254 = vmatpush.msrb.mxu3 %v1138_v57  ;;  %v1130_v57 = vmul.f32 %v2377_v25, %v2377_v25  ;;  %v1200_v15 = vld.sshfl [vmem:[#allocation1 + $0x18] sm:$0xff pattern:$0x75316420]  ;;  %v1191_v25 = vmul.f32 %v2406_v39, %v2406_v39  ;;  %v1168_v39 = vmul.f32 %v2436_v55, %v2436_v55 }
 0x1d4   :  { %v1165_v55 = vmul.f32 %v2466_v40, %v2466_v40  ;;  %v1162_v40 = vmul.f32 %v2492_v10, %v2492_v10  ;;  %v1201_v10 = vld.sshfl [vmem:[#allocation1 + $0x20] sm:$0xff pattern:$0x75316420] }
 0x1d5   :  { %1239 = vmatpush.msrb.mxu2 %v1117_v63  ;;  %1255 = vmatpush.msrb.mxu3 %v1137_v2  ;;  %v1187_v2 = vmul.f32 %v2450_v58, %v2450_v58  ;;  %v1186_v63 = vmul.f32 %v2719_v5, %v2719_v5  ;;  %v1184_v58 = vmul.f32 %v2481_v0, %v2481_v0 }
 0x1d6   :  { %1285 = vmatmul.f32.vlgmr.msra.gmra.mxu1 %v1200_v15  ;;  %v1181_v0 = vmul.f32 %v2502_v17, %v2502_v17  ;;  %v1177_v17 = vmul.f32 %v2527_v48, %v2527_v48 }
 0x1d7   :  { %1240 = vmatpush.msrb.mxu2 %v1116_v43  ;;  %1256 = vmatpush.msrb.mxu3 %v1136_v28  ;;  %v992_v28 = vpop.f32.mrf.mxu1 }
 0x1d9   :  { %1241 = vmatpush.msrb.mxu2 %v1115_v16  ;;  %1257 = vmatpush.msrb.mxu3 %v1135_v36 }
 0x1db   :  { %1242 = vmatpush.msrb.mxu2 %v1114_v31  ;;  %1258 = vmatpush.msrb.mxu3 %v1134_v6 }
 0x1dd   :  { %1243 = vmatpush.msrb.mxu2 %v1113_v22  ;;  %1259 = vmatpush.msrb.mxu3 %v1133_v29 }
 0x1df   :  { %1244 = vmatpush.msrb.mxu2 %v1112_v8  ;;  %1260 = vmatpush.msrb.mxu3 %v1132_v34  ;;  %v1052_v44 = vpop.f32.mrf.mxu1 }
 0x1e0   :  { %1245 = vmatmul.f32.vlgmr.msrb.gmra.mxu2 %v1198_v20 }
 0x1e1   :  { %1289 = vmatpush.msra.mxu2 %v1175_v50  ;;  %1261 = vmatpush.msrb.mxu3 %v1131_v19 }
 0x1e3   :  { %1290 = vmatpush.msra.mxu2 %v1174_v12  ;;  %1262 = vmatpush.msrb.mxu3 %v1130_v57 }
 0x1e5   :  { %1291 = vmatpush.msra.mxu2 %v1173_v45  ;;  %1263 = vmatpush.msrb.mxu3 %v1129_v18 }
 0x1e7   :  { %1292 = vmatpush.msra.mxu2 %v1172_v41  ;;  %1264 = vmatpush.msrb.mxu3 %v1128_v47 }
 0x1e8   :  { %1265 = vmatmul.f32.vlgmr.msrb.gmra.mxu3 %v1199_v35 }
 0x1e9   :  { %1293 = vmatpush.msra.mxu2 %v1171_v27  ;;  %1309 = vmatpush.msra.mxu3 %v1191_v25 }
 0x1eb   :  { %1294 = vmatpush.msra.mxu2 %v1170_v9  ;;  %1310 = vmatpush.msra.mxu3 %v1190_v3 }
 0x1ed   :  { %1295 = vmatpush.msra.mxu2 %v1169_v33  ;;  %1311 = vmatpush.msra.mxu3 %v1189_v38 }
 0x1ef   :  { %1296 = vmatpush.msra.mxu2 %v1168_v39  ;;  %1312 = vmatpush.msra.mxu3 %v1188_v52 }
 0x1f1   :  { %1297 = vmatpush.msra.mxu2 %v1167_v21  ;;  %1313 = vmatpush.msra.mxu3 %v1187_v2 }
 0x1f3   :  { %1298 = vmatpush.msra.mxu2 %v1166_v54  ;;  %1314 = vmatpush.msra.mxu3 %v1186_v63 }
 0x1f5   :  { %1299 = vmatpush.msra.mxu2 %v1165_v55  ;;  %1315 = vmatpush.msra.mxu3 %v1185_v4 }
 0x1f7   :  { %1300 = vmatpush.msra.mxu2 %v1164_v59  ;;  %1316 = vmatpush.msra.mxu3 %v1184_v58 }
 0x1f9   :  { %1301 = vmatpush.msra.mxu2 %v1163_v23  ;;  %1317 = vmatpush.msra.mxu3 %v1183_v13 }
 0x1fb   :  { %1302 = vmatpush.msra.mxu2 %v1162_v40  ;;  %1318 = vmatpush.msra.mxu3 %v1182_v51 }
 0x1fd   :  { %1303 = vmatpush.msra.mxu2 %v1161_v37  ;;  %1319 = vmatpush.msra.mxu3 %v1181_v0 }
 0x1ff   :  { %1304 = vmatpush.msra.mxu2 %v1160_v30  ;;  %1320 = vmatpush.msra.mxu3 %v1180_v14 }
 0x200   :  { %1305 = vmatmul.f32.vlgmr.msra.gmra.mxu2 %v1201_v10 }
 0x201   :  { %1321 = vmatpush.msra.mxu3 %v1179_v24 }
 0x203   :  { %1322 = vmatpush.msra.mxu3 %v1178_v1 }
 0x205   :  { %1323 = vmatpush.msra.mxu3 %v1177_v17 }
 0x207   :  { %1324 = vmatpush.msra.mxu3 %v1176_v62 }
 0x208   :  { %1325 = vmatmul.f32.vlgmr.msra.gmra.mxu3 %v1202_v53 }
 0x223   :  { %v1012_v43 = vpop.f32.mrf.mxu2 }
 0x224   :  { %v1013_v26 = vadd.f32 %v1012_v43, %v992_v28 }
 0x22b   :  { %v1032_v42 = vpop.f32.mrf.mxu3 }
 0x22c   :  { %v1033_v36 = vadd.f32 %v1032_v42, %v1013_v26 }
 0x22e   :  { %v1053_v16 = vadd.f32 %v1052_v44, %v1033_v36 }
 0x243   :  { %v1072_v46 = vpop.f32.mrf.mxu2 }
 0x244   :  { %v1073_v61 = vadd.f32 %v1072_v46, %v1053_v16 }
 0x24b   :  { %v1092_v6 = vpop.f32.mrf.mxu3  ;;  %v1226_v48 = vpop.f32.mrf.mxu1 }
 0x24c   :  { %v1093_v7 = vadd.f32 %v1092_v6, %v1073_v61 }
 0x24e   :  { %1095 = vst [vmem:[%s2667_s4] sm:$0xf] %v1093_v7 }
 0x253   :  { %v1286_v32 = vpop.f32.mrf.mxu1 }
 0x263   :  { %v1246_v56 = vpop.f32.mrf.mxu2 }
 0x264   :  { %v1247_v31 = vadd.f32 %v1246_v56, %v1226_v48 }
 0x26b   :  { %v1266_v11 = vpop.f32.mrf.mxu3 }
 0x26c   :  { %v1267_v29 = vadd.f32 %v1266_v11, %v1247_v31 }
 0x26e   :  { %v1287_v22 = vadd.f32 %v1286_v32, %v1267_v29 }
 0x283   :  { %v1306_v60 = vpop.f32.mrf.mxu2 }
 0x284   :  { %v1307_v49 = vadd.f32 %v1306_v60, %v1287_v22 }
 0x28b   :  { %v1326_v34 = vpop.f32.mrf.mxu3 }
 0x28c   :  { %v1327_v8 = vadd.f32 %v1326_v34, %v1307_v49 }
 0x28e   :  { %1329 = vst [vmem:[%s2667_s4 + $0x4] sm:$0xf] %v1327_v8 }

// kernel: up_forward.3
= control target key start
LH: loop header
LB: loop body
LE: loop exit
PB: predicated region body
PF: predicated region fallthrough
CT: control target
= control target key end

     0   :  { %vm369_vm0 = vcmask 130048   ;;  %s2388_s1 = inlined_call_operand.vmem [shape: bf16[16,128], index: 1, kind: input, shape index: {}]   ;;  %s2389_s0 = inlined_call_operand.vmem [shape: bf16[768,16], index: 0, kind: input, shape index: {}]   ;;  %s2390_s2 = inlined_call_operand.vmem [shape: f32[1,128], index: 2, kind: input, shape index: {}]   ;;  %s2391_s3 = inlined_call_operand.vmem [shape: f32[1,128], index: 3, kind: input, shape index: {}]   ;;  %s2392_s4 = inlined_call_operand.vmem [shape: f32[1,128], index: 4, kind: input, shape index: {}]   ;;  %s2393_s5 = inlined_call_operand.vmem [shape: f32[768,128], index: 5, kind: output, shape index: {}]  }
   0x1   :  { %v1547_v0 = vld [vmem:[%s2388_s1] sm:$0xff]  ;;  %v1500_v5 = vld [vmem:[%s2389_s0 + $0x8] sm:$0xff]  ;;  %v1501_v9 = vld [vmem:[%s2389_s0 + $0x10] sm:$0xff] }
   0x2   :  { %v1499_v1 = vld [vmem:[%s2389_s0] sm:$0xff]  ;;  %521 = vmatpush.bf16.msra.mxu0 %v1547_v0  ;;  %1548 = vmatpush.bf16.msra.mxu1 %v1547_v0  ;;  %v1512_v6 = vld [vmem:[%s2389_s0 + $0x68] sm:$0xff]  ;;  %v1513_v10 = vld [vmem:[%s2389_s0 + $0x70] sm:$0xff] }
   0x3   :  { %v1511_v2 = vld [vmem:[%s2389_s0 + $0x60] sm:$0xff]  ;;  %1549 = vmatpush.bf16.msra.mxu2 %v1547_v0  ;;  %1550 = vmatpush.bf16.msra.mxu3 %v1547_v0  ;;  %v1524_v7 = vld [vmem:[%s2389_s0 + $0xc8] sm:$0xff]  ;;  %v1525_v11 = vld [vmem:[%s2389_s0 + $0xd0] sm:$0xff] }
   0x4   :  { %v1523_v3 = vld [vmem:[%s2389_s0 + $0xc0] sm:$0xff]  ;;  %v1536_v8 = vld [vmem:[%s2389_s0 + $0x128] sm:$0xff]  ;;  %v1537_v12 = vld [vmem:[%s2389_s0 + $0x130] sm:$0xff] }
   0x5   :  { %v1535_v4 = vld [vmem:[%s2389_s0 + $0x120] sm:$0xff]  ;;  %1451 = vmatmul.msk.bf16.vlgmr.msra.gmra.mxu0 %vm369_vm0, %v1499_v1  ;;  %1463 = vmatmul.msk.bf16.vlgmr.msra.gmra.mxu1 %vm369_vm0, %v1511_v2  ;;  %v1502_v13 = vld [vmem:[%s2389_s0 + $0x18] sm:$0xff]  ;;  %v1504_v21 = vld [vmem:[%s2389_s0 + $0x28] sm:$0xff] }
   0x6   :  { %1475 = vmatmul.msk.bf16.vlgmr.msra.gmra.mxu2 %vm369_vm0, %v1523_v3  ;;  %1487 = vmatmul.msk.bf16.vlgmr.msra.gmra.mxu3 %vm369_vm0, %v1535_v4  ;;  %v1514_v14 = vld [vmem:[%s2389_s0 + $0x78] sm:$0xff]  ;;  %v1503_v17 = vld [vmem:[%s2389_s0 + $0x20] sm:$0xff]  ;;  %v1516_v22 = vld [vmem:[%s2389_s0 + $0x88] sm:$0xff] }
   0x7   :  { %v1526_v15 = vld [vmem:[%s2389_s0 + $0xd8] sm:$0xff]  ;;  %v1515_v18 = vld [vmem:[%s2389_s0 + $0x80] sm:$0xff]  ;;  %v1528_v23 = vld [vmem:[%s2389_s0 + $0xe8] sm:$0xff] }
   0x8   :  { %v1538_v16 = vld [vmem:[%s2389_s0 + $0x138] sm:$0xff]  ;;  %v1527_v19 = vld [vmem:[%s2389_s0 + $0xe0] sm:$0xff]  ;;  %v1540_v24 = vld [vmem:[%s2389_s0 + $0x148] sm:$0xff] }
   0x9   :  { %v1539_v20 = vld [vmem:[%s2389_s0 + $0x140] sm:$0xff]  ;;  %v1505_v25 = vld [vmem:[%s2389_s0 + $0x30] sm:$0xff]  ;;  %v1506_v29 = vld [vmem:[%s2389_s0 + $0x38] sm:$0xff] }
   0xa   :  { %v1517_v26 = vld [vmem:[%s2389_s0 + $0x90] sm:$0xff]  ;;  %v1518_v30 = vld [vmem:[%s2389_s0 + $0x98] sm:$0xff]  ;;  %v1721_v33 = vld [vmem:[%s2390_s2] ss:$0 sm:$0xff] }
   0xb   :  { %v1529_v27 = vld [vmem:[%s2389_s0 + $0xf0] sm:$0xff]  ;;  %v1530_v31 = vld [vmem:[%s2389_s0 + $0xf8] sm:$0xff]  ;;  %v1507_v34 = vld [vmem:[%s2389_s0 + $0x40] sm:$0xff] }
   0xc   :  { %v1541_v28 = vld [vmem:[%s2389_s0 + $0x150] sm:$0xff]  ;;  %v1542_v32 = vld [vmem:[%s2389_s0 + $0x158] sm:$0xff]  ;;  %v1519_v35 = vld [vmem:[%s2389_s0 + $0xa0] sm:$0xff] }
   0xd   :  { %v1531_v38 = vld [vmem:[%s2389_s0 + $0x100] sm:$0xff] }
   0xe   :  { %v1543_v39 = vld [vmem:[%s2389_s0 + $0x160] sm:$0xff] }
   0xf   :  { %v1740_v43 = vld [vmem:[%s2391_s3] ss:$0 sm:$0xff] }
  0x10   :  { %v1749_v46 = vld [vmem:[%s2392_s4] ss:$0 sm:$0xff] }
  0x15   :  { %1452 = vmatmul.msk.bf16.gmra.mxu0 %vm369_vm0, %v1500_v5  ;;  %1464 = vmatmul.msk.bf16.gmra.mxu1 %vm369_vm0, %v1512_v6 }
  0x16   :  { %1476 = vmatmul.msk.bf16.gmra.mxu2 %vm369_vm0, %v1524_v7  ;;  %1488 = vmatmul.msk.bf16.gmra.mxu3 %vm369_vm0, %v1536_v8 }
  0x25   :  { %1453 = vmatmul.msk.bf16.gmra.mxu0 %vm369_vm0, %v1501_v9  ;;  %1465 = vmatmul.msk.bf16.gmra.mxu1 %vm369_vm0, %v1513_v10  ;;  %v1508_v10 = vld [vmem:[%s2389_s0 + $0x48] sm:$0xff] }
  0x26   :  { %1477 = vmatmul.msk.bf16.gmra.mxu2 %vm369_vm0, %v1525_v11  ;;  %1489 = vmatmul.msk.bf16.gmra.mxu3 %vm369_vm0, %v1537_v12  ;;  %v1520_v11 = vld [vmem:[%s2389_s0 + $0xa8] sm:$0xff] }
  0x35   :  { %1454 = vmatmul.msk.bf16.gmra.mxu0 %vm369_vm0, %v1502_v13  ;;  %1466 = vmatmul.msk.bf16.gmra.mxu1 %vm369_vm0, %v1514_v14 }
  0x36   :  { %1478 = vmatmul.msk.bf16.gmra.mxu2 %vm369_vm0, %v1526_v15  ;;  %1490 = vmatmul.msk.bf16.gmra.mxu3 %vm369_vm0, %v1538_v16 }
  0x45   :  { %1455 = vmatmul.msk.bf16.gmra.mxu0 %vm369_vm0, %v1503_v17  ;;  %1467 = vmatmul.msk.bf16.gmra.mxu1 %vm369_vm0, %v1515_v18  ;;  %v1532_v18 = vld [vmem:[%s2389_s0 + $0x108] sm:$0xff] }
  0x46   :  { %1479 = vmatmul.msk.bf16.gmra.mxu2 %vm369_vm0, %v1527_v19  ;;  %1491 = vmatmul.msk.bf16.gmra.mxu3 %vm369_vm0, %v1539_v20  ;;  %v1544_v19 = vld [vmem:[%s2389_s0 + $0x168] sm:$0xff] }
  0x55   :  { %1456 = vmatmul.msk.bf16.gmra.mxu0 %vm369_vm0, %v1504_v21  ;;  %1468 = vmatmul.msk.bf16.gmra.mxu1 %vm369_vm0, %v1516_v22 }
  0x56   :  { %1480 = vmatmul.msk.bf16.gmra.mxu2 %vm369_vm0, %v1528_v23  ;;  %1492 = vmatmul.msk.bf16.gmra.mxu3 %vm369_vm0, %v1540_v24 }
  0x65   :  { %1457 = vmatmul.msk.bf16.gmra.mxu0 %vm369_vm0, %v1505_v25  ;;  %1469 = vmatmul.msk.bf16.gmra.mxu1 %vm369_vm0, %v1517_v26 }
  0x66   :  { %1481 = vmatmul.msk.bf16.gmra.mxu2 %vm369_vm0, %v1529_v27  ;;  %1493 = vmatmul.msk.bf16.gmra.mxu3 %vm369_vm0, %v1541_v28 }
  0x75   :  { %1458 = vmatmul.msk.bf16.gmra.mxu0 %vm369_vm0, %v1506_v29  ;;  %1470 = vmatmul.msk.bf16.gmra.mxu1 %vm369_vm0, %v1518_v30 }
  0x76   :  { %1482 = vmatmul.msk.bf16.gmra.mxu2 %vm369_vm0, %v1530_v31  ;;  %1494 = vmatmul.msk.bf16.gmra.mxu3 %vm369_vm0, %v1542_v32 }
  0x82   :  { %v523_v36 = vpop.f32.mrf.mxu0  ;;  %v583_v37 = vpop.f32.mrf.mxu1 }
  0x83   :  { %v524_v40 = vadd.f32 %v1721_v33, %v523_v36  ;;  %v584_v41 = vadd.f32 %v1721_v33, %v583_v37 }
  0x85   :  { %v763_v42 = vmul.f32 0.01, %v524_v40  ;;  %v787_v44 = vmul.f32 0.01, %v584_v41  ;;  %1459 = vmatmul.msk.bf16.gmra.mxu0 %vm369_vm0, %v1507_v34  ;;  %1471 = vmatmul.msk.bf16.gmra.mxu1 %vm369_vm0, %v1519_v35 }
  0x86   :  { %1483 = vmatmul.msk.bf16.gmra.mxu2 %vm369_vm0, %v1531_v38  ;;  %1495 = vmatmul.msk.bf16.gmra.mxu3 %vm369_vm0, %v1543_v39 }
  0x87   :  { %v859_v45 = vmax.f32 %v524_v40, %v763_v42  ;;  %v883_v47 = vmax.f32 %v584_v41, %v787_v44 }
  0x89   :  { %v959_v48 = vmul.f32 %v1740_v43, %v859_v45  ;;  %v983_v49 = vmul.f32 %v1740_v43, %v883_v47  ;;  %v643_v50 = vpop.f32.mrf.mxu2  ;;  %v703_v51 = vpop.f32.mrf.mxu3 }
  0x8a   :  { %v644_v52 = vadd.f32 %v1721_v33, %v643_v50  ;;  %v704_v53 = vadd.f32 %v1721_v33, %v703_v51  ;;  %v525_v54 = vpop.f32.mrf.mxu0  ;;  %v585_v55 = vpop.f32.mrf.mxu1 }
  0x8b   :  { %v1059_v56 = vadd.f32 %v1749_v46, %v959_v48  ;;  %v1083_v57 = vadd.f32 %v1749_v46, %v983_v49  ;;  %v526_v58 = vadd.f32 %v1721_v33, %v525_v54  ;;  %v586_v59 = vadd.f32 %v1721_v33, %v585_v55 }
  0x8c   :  { %v811_v60 = vmul.f32 0.01, %v644_v52  ;;  %v835_v61 = vmul.f32 0.01, %v704_v53 }
  0x8d   :  { %1155 = vst [vmem:[%s2393_s5] sm:$0xff] %v1059_v56  ;;  %v764_v62 = vmul.f32 0.01, %v526_v58  ;;  %v788_v63 = vmul.f32 0.01, %v586_v59 }
  0x8e   :  { %1179 = vst [vmem:[%s2393_s5 + $0xc0] sm:$0xff] %v1083_v57  ;;  %v907_v0 = vmax.f32 %v644_v52, %v811_v60  ;;  %v931_v1 = vmax.f32 %v704_v53, %v835_v61 }
  0x8f   :  { %v860_v2 = vmax.f32 %v526_v58, %v764_v62  ;;  %v884_v3 = vmax.f32 %v586_v59, %v788_v63 }
  0x90   :  { %v1007_v4 = vmul.f32 %v1740_v43, %v907_v0  ;;  %v1031_v5 = vmul.f32 %v1740_v43, %v931_v1  ;;  %v1509_v1 = vld [vmem:[%s2389_s0 + $0x50] sm:$0xff] }
  0x91   :  { %v960_v6 = vmul.f32 %v1740_v43, %v860_v2  ;;  %v984_v7 = vmul.f32 %v1740_v43, %v884_v3  ;;  %v645_v8 = vpop.f32.mrf.mxu2  ;;  %v705_v9 = vpop.f32.mrf.mxu3  ;;  %v1521_v2 = vld [vmem:[%s2389_s0 + $0xb0] sm:$0xff] }
  0x92   :  { %v1107_v12 = vadd.f32 %v1749_v46, %v1007_v4  ;;  %v1131_v13 = vadd.f32 %v1749_v46, %v1031_v5  ;;  %v646_v14 = vadd.f32 %v1721_v33, %v645_v8  ;;  %v706_v15 = vadd.f32 %v1721_v33, %v705_v9  ;;  %v528_v16 = vpop.f32.mrf.mxu0  ;;  %v588_v17 = vpop.f32.mrf.mxu1  ;;  %v1533_v9 = vld [vmem:[%s2389_s0 + $0x110] sm:$0xff] }
  0x93   :  { %v1060_v20 = vadd.f32 %v1749_v46, %v960_v6  ;;  %v1084_v21 = vadd.f32 %v1749_v46, %v984_v7  ;;  %v529_v22 = vadd.f32 %v1721_v33, %v528_v16  ;;  %v589_v23 = vadd.f32 %v1721_v33, %v588_v17 }
  0x94   :  { %1203 = vst [vmem:[%s2393_s5 + $0x180] sm:$0xff] %v1107_v12  ;;  %v812_v24 = vmul.f32 0.01, %v646_v14  ;;  %v836_v25 = vmul.f32 0.01, %v706_v15 }
  0x95   :  { %1227 = vst [vmem:[%s2393_s5 + $0x240] sm:$0xff] %v1131_v13  ;;  %v765_v26 = vmul.f32 0.01, %v529_v22  ;;  %v789_v27 = vmul.f32 0.01, %v589_v23  ;;  %1460 = vmatmul.msk.bf16.gmra.mxu0 %vm369_vm0, %v1508_v10  ;;  %1472 = vmatmul.msk.bf16.gmra.mxu1 %vm369_vm0, %v1520_v11  ;;  %v1545_v10 = vld [vmem:[%s2389_s0 + $0x170] sm:$0xff] }
  0x96   :  { %1156 = vst [vmem:[%s2393_s5 + $0x8] sm:$0xff] %v1060_v20  ;;  %v908_v28 = vmax.f32 %v646_v14, %v812_v24  ;;  %v932_v29 = vmax.f32 %v706_v15, %v836_v25  ;;  %1484 = vmatmul.msk.bf16.gmra.mxu2 %vm369_vm0, %v1532_v18  ;;  %1496 = vmatmul.msk.bf16.gmra.mxu3 %vm369_vm0, %v1544_v19 }
  0x97   :  { %1180 = vst [vmem:[%s2393_s5 + $0xc8] sm:$0xff] %v1084_v21  ;;  %v861_v30 = vmax.f32 %v529_v22, %v765_v26  ;;  %v885_v31 = vmax.f32 %v589_v23, %v789_v27 }
  0x98   :  { %v1008_v32 = vmul.f32 %v1740_v43, %v908_v28  ;;  %v1032_v34 = vmul.f32 %v1740_v43, %v932_v29 }
  0x99   :  { %v961_v35 = vmul.f32 %v1740_v43, %v861_v30  ;;  %v985_v36 = vmul.f32 %v1740_v43, %v885_v31  ;;  %v648_v37 = vpop.f32.mrf.mxu2  ;;  %v708_v38 = vpop.f32.mrf.mxu3 }
  0x9a   :  { %v1108_v39 = vadd.f32 %v1749_v46, %v1008_v32  ;;  %v1132_v40 = vadd.f32 %v1749_v46, %v1032_v34  ;;  %v649_v41 = vadd.f32 %v1721_v33, %v648_v37  ;;  %v709_v42 = vadd.f32 %v1721_v33, %v708_v38  ;;  %v530_v44 = vpop.f32.mrf.mxu0  ;;  %v590_v45 = vpop.f32.mrf.mxu1 }
  0x9b   :  { %v1061_v47 = vadd.f32 %v1749_v46, %v961_v35  ;;  %v1085_v48 = vadd.f32 %v1749_v46, %v985_v36  ;;  %v531_v49 = vadd.f32 %v1721_v33, %v530_v44  ;;  %v591_v50 = vadd.f32 %v1721_v33, %v590_v45 }
  0x9c   :  { %1204 = vst [vmem:[%s2393_s5 + $0x188] sm:$0xff] %v1108_v39  ;;  %v813_v51 = vmul.f32 0.01, %v649_v41  ;;  %v837_v52 = vmul.f32 0.01, %v709_v42 }
  0x9d   :  { %1228 = vst [vmem:[%s2393_s5 + $0x248] sm:$0xff] %v1132_v40  ;;  %v766_v53 = vmul.f32 0.01, %v531_v49  ;;  %v790_v54 = vmul.f32 0.01, %v591_v50 }
  0x9e   :  { %1157 = vst [vmem:[%s2393_s5 + $0x10] sm:$0xff] %v1061_v47  ;;  %v909_v55 = vmax.f32 %v649_v41, %v813_v51  ;;  %v933_v56 = vmax.f32 %v709_v42, %v837_v52 }
  0x9f   :  { %1181 = vst [vmem:[%s2393_s5 + $0xd0] sm:$0xff] %v1085_v48  ;;  %v862_v57 = vmax.f32 %v531_v49, %v766_v53  ;;  %v886_v58 = vmax.f32 %v591_v50, %v790_v54 }
  0xa0   :  { %v1009_v59 = vmul.f32 %v1740_v43, %v909_v55  ;;  %v1033_v60 = vmul.f32 %v1740_v43, %v933_v56  ;;  %v1510_v56 = vld [vmem:[%s2389_s0 + $0x58] sm:$0xff] }
  0xa1   :  { %v962_v61 = vmul.f32 %v1740_v43, %v862_v57  ;;  %v986_v62 = vmul.f32 %v1740_v43, %v886_v58  ;;  %v650_v63 = vpop.f32.mrf.mxu2  ;;  %v710_v0 = vpop.f32.mrf.mxu3  ;;  %v1522_v57 = vld [vmem:[%s2389_s0 + $0xb8] sm:$0xff] }
  0xa2   :  { %v1109_v3 = vadd.f32 %v1749_v46, %v1009_v59  ;;  %v1133_v4 = vadd.f32 %v1749_v46, %v1033_v60  ;;  %v651_v5 = vadd.f32 %v1721_v33, %v650_v63  ;;  %v711_v6 = vadd.f32 %v1721_v33, %v710_v0  ;;  %v533_v7 = vpop.f32.mrf.mxu0  ;;  %v593_v8 = vpop.f32.mrf.mxu1  ;;  %v1534_v0 = vld [vmem:[%s2389_s0 + $0x118] sm:$0xff] }
  0xa3   :  { %v1062_v11 = vadd.f32 %v1749_v46, %v962_v61  ;;  %v1086_v12 = vadd.f32 %v1749_v46, %v986_v62  ;;  %v534_v13 = vadd.f32 %v1721_v33, %v533_v7  ;;  %v594_v14 = vadd.f32 %v1721_v33, %v593_v8 }
  0xa4   :  { %1205 = vst [vmem:[%s2393_s5 + $0x190] sm:$0xff] %v1109_v3  ;;  %v814_v15 = vmul.f32 0.01, %v651_v5  ;;  %v838_v16 = vmul.f32 0.01, %v711_v6 }
  0xa5   :  { %1229 = vst [vmem:[%s2393_s5 + $0x250] sm:$0xff] %v1133_v4  ;;  %v767_v17 = vmul.f32 0.01, %v534_v13  ;;  %v791_v18 = vmul.f32 0.01, %v594_v14  ;;  %1461 = vmatmul.msk.bf16.gmra.mxu0 %vm369_vm0, %v1509_v1  ;;  %1473 = vmatmul.msk.bf16.gmra.mxu1 %vm369_vm0, %v1521_v2  ;;  %v1546_v1 = vld [vmem:[%s2389_s0 + $0x178] sm:$0xff] }
  0xa6   :  { %1158 = vst [vmem:[%s2393_s5 + $0x18] sm:$0xff] %v1062_v11  ;;  %v910_v19 = vmax.f32 %v651_v5, %v814_v15  ;;  %v934_v20 = vmax.f32 %v711_v6, %v838_v16  ;;  %1485 = vmatmul.msk.bf16.gmra.mxu2 %vm369_vm0, %v1533_v9  ;;  %1497 = vmatmul.msk.bf16.gmra.mxu3 %vm369_vm0, %v1545_v10 }
  0xa7   :  { %1182 = vst [vmem:[%s2393_s5 + $0xd8] sm:$0xff] %v1086_v12  ;;  %v863_v21 = vmax.f32 %v534_v13, %v767_v17  ;;  %v887_v22 = vmax.f32 %v594_v14, %v791_v18 }
  0xa8   :  { %v1010_v23 = vmul.f32 %v1740_v43, %v910_v19  ;;  %v1034_v24 = vmul.f32 %v1740_v43, %v934_v20 }
  0xa9   :  { %v963_v25 = vmul.f32 %v1740_v43, %v863_v21  ;;  %v987_v26 = vmul.f32 %v1740_v43, %v887_v22  ;;  %v653_v27 = vpop.f32.mrf.mxu2  ;;  %v713_v28 = vpop.f32.mrf.mxu3 }
  0xaa   :  { %v1110_v29 = vadd.f32 %v1749_v46, %v1010_v23  ;;  %v1134_v30 = vadd.f32 %v1749_v46, %v1034_v24  ;;  %v654_v31 = vadd.f32 %v1721_v33, %v653_v27  ;;  %v714_v32 = vadd.f32 %v1721_v33, %v713_v28  ;;  %v535_v34 = vpop.f32.mrf.mxu0  ;;  %v595_v35 = vpop.f32.mrf.mxu1 }
  0xab   :  { %v1063_v36 = vadd.f32 %v1749_v46, %v963_v25  ;;  %v1087_v37 = vadd.f32 %v1749_v46, %v987_v26  ;;  %v536_v38 = vadd.f32 %v1721_v33, %v535_v34  ;;  %v596_v39 = vadd.f32 %v1721_v33, %v595_v35 }
  0xac   :  { %1206 = vst [vmem:[%s2393_s5 + $0x198] sm:$0xff] %v1110_v29  ;;  %v815_v40 = vmul.f32 0.01, %v654_v31  ;;  %v839_v41 = vmul.f32 0.01, %v714_v32 }
  0xad   :  { %1230 = vst [vmem:[%s2393_s5 + $0x258] sm:$0xff] %v1134_v30  ;;  %v768_v42 = vmul.f32 0.01, %v536_v38  ;;  %v792_v44 = vmul.f32 0.01, %v596_v39 }
  0xae   :  { %1159 = vst [vmem:[%s2393_s5 + $0x20] sm:$0xff] %v1063_v36  ;;  %v911_v45 = vmax.f32 %v654_v31, %v815_v40  ;;  %v935_v47 = vmax.f32 %v714_v32, %v839_v41 }
  0xaf   :  { %1183 = vst [vmem:[%s2393_s5 + $0xe0] sm:$0xff] %v1087_v37  ;;  %v864_v48 = vmax.f32 %v536_v38, %v768_v42  ;;  %v888_v49 = vmax.f32 %v596_v39, %v792_v44 }
  0xb0   :  { %v1011_v50 = vmul.f32 %v1740_v43, %v911_v45  ;;  %v1035_v51 = vmul.f32 %v1740_v43, %v935_v47 }
  0xb1   :  { %v964_v52 = vmul.f32 %v1740_v43, %v864_v48  ;;  %v988_v53 = vmul.f32 %v1740_v43, %v888_v49  ;;  %v655_v54 = vpop.f32.mrf.mxu2  ;;  %v715_v55 = vpop.f32.mrf.mxu3 }
  0xb2   :  { %v1111_v58 = vadd.f32 %v1749_v46, %v1011_v50  ;;  %v1135_v59 = vadd.f32 %v1749_v46, %v1035_v51  ;;  %v656_v60 = vadd.f32 %v1721_v33, %v655_v54  ;;  %v716_v61 = vadd.f32 %v1721_v33, %v715_v55  ;;  %v538_v62 = vpop.f32.mrf.mxu0  ;;  %v598_v63 = vpop.f32.mrf.mxu1 }
  0xb3   :  { %v1064_v2 = vadd.f32 %v1749_v46, %v964_v52  ;;  %v1088_v3 = vadd.f32 %v1749_v46, %v988_v53  ;;  %v539_v4 = vadd.f32 %v1721_v33, %v538_v62  ;;  %v599_v5 = vadd.f32 %v1721_v33, %v598_v63 }
  0xb4   :  { %1207 = vst [vmem:[%s2393_s5 + $0x1a0] sm:$0xff] %v1111_v58  ;;  %v816_v6 = vmul.f32 0.01, %v656_v60  ;;  %v840_v7 = vmul.f32 0.01, %v716_v61 }
  0xb5   :  { %1231 = vst [vmem:[%s2393_s5 + $0x260] sm:$0xff] %v1135_v59  ;;  %v769_v8 = vmul.f32 0.01, %v539_v4  ;;  %v793_v9 = vmul.f32 0.01, %v599_v5  ;;  %1462 = vmatmul.msk.bf16.gmra.mxu0 %vm369_vm0, %v1510_v56  ;;  %1474 = vmatmul.msk.bf16.gmra.mxu1 %vm369_vm0, %v1522_v57 }
  0xb6   :  { %1160 = vst [vmem:[%s2393_s5 + $0x28] sm:$0xff] %v1064_v2  ;;  %v912_v10 = vmax.f32 %v656_v60, %v816_v6  ;;  %v936_v11 = vmax.f32 %v716_v61, %v840_v7  ;;  %1486 = vmatmul.msk.bf16.gmra.mxu2 %vm369_vm0, %v1534_v0  ;;  %1498 = vmatmul.msk.bf16.gmra.mxu3 %vm369_vm0, %v1546_v1 }
  0xb7   :  { %1184 = vst [vmem:[%s2393_s5 + $0xe8] sm:$0xff] %v1088_v3  ;;  %v865_v12 = vmax.f32 %v539_v4, %v769_v8  ;;  %v889_v13 = vmax.f32 %v599_v5, %v793_v9 }
  0xb8   :  { %v1012_v14 = vmul.f32 %v1740_v43, %v912_v10  ;;  %v1036_v15 = vmul.f32 %v1740_v43, %v936_v11 }
  0xb9   :  { %v965_v16 = vmul.f32 %v1740_v43, %v865_v12  ;;  %v989_v17 = vmul.f32 %v1740_v43, %v889_v13  ;;  %v658_v18 = vpop.f32.mrf.mxu2  ;;  %v718_v19 = vpop.f32.mrf.mxu3 }
  0xba   :  { %v1112_v20 = vadd.f32 %v1749_v46, %v1012_v14  ;;  %v1136_v21 = vadd.f32 %v1749_v46, %v1036_v15  ;;  %v659_v22 = vadd.f32 %v1721_v33, %v658_v18  ;;  %v719_v23 = vadd.f32 %v1721_v33, %v718_v19  ;;  %v540_v24 = vpop.f32.mrf.mxu0  ;;  %v600_v25 = vpop.f32.mrf.mxu1 }
  0xbb   :  { %v1065_v26 = vadd.f32 %v1749_v46, %v965_v16  ;;  %v1089_v27 = vadd.f32 %v1749_v46, %v989_v17  ;;  %v541_v28 = vadd.f32 %v1721_v33, %v540_v24  ;;  %v601_v29 = vadd.f32 %v1721_v33, %v600_v25 }
  0xbc   :  { %1208 = vst [vmem:[%s2393_s5 + $0x1a8] sm:$0xff] %v1112_v20  ;;  %v817_v30 = vmul.f32 0.01, %v659_v22  ;;  %v841_v31 = vmul.f32 0.01, %v719_v23 }
  0xbd   :  { %1232 = vst [vmem:[%s2393_s5 + $0x268] sm:$0xff] %v1136_v21  ;;  %v770_v32 = vmul.f32 0.01, %v541_v28  ;;  %v794_v34 = vmul.f32 0.01, %v601_v29 }
  0xbe   :  { %1161 = vst [vmem:[%s2393_s5 + $0x30] sm:$0xff] %v1065_v26  ;;  %v913_v35 = vmax.f32 %v659_v22, %v817_v30  ;;  %v937_v36 = vmax.f32 %v719_v23, %v841_v31 }
  0xbf   :  { %1185 = vst [vmem:[%s2393_s5 + $0xf0] sm:$0xff] %v1089_v27  ;;  %v866_v37 = vmax.f32 %v541_v28, %v770_v32  ;;  %v890_v38 = vmax.f32 %v601_v29, %v794_v34 }
  0xc0   :  { %v1013_v39 = vmul.f32 %v1740_v43, %v913_v35  ;;  %v1037_v40 = vmul.f32 %v1740_v43, %v937_v36 }
  0xc1   :  { %v966_v41 = vmul.f32 %v1740_v43, %v866_v37  ;;  %v990_v42 = vmul.f32 %v1740_v43, %v890_v38  ;;  %v660_v44 = vpop.f32.mrf.mxu2  ;;  %v720_v45 = vpop.f32.mrf.mxu3 }
  0xc2   :  { %v1113_v47 = vadd.f32 %v1749_v46, %v1013_v39  ;;  %v1137_v48 = vadd.f32 %v1749_v46, %v1037_v40  ;;  %v661_v49 = vadd.f32 %v1721_v33, %v660_v44  ;;  %v721_v50 = vadd.f32 %v1721_v33, %v720_v45  ;;  %v543_v51 = vpop.f32.mrf.mxu0  ;;  %v603_v52 = vpop.f32.mrf.mxu1 }
  0xc3   :  { %v1066_v53 = vadd.f32 %v1749_v46, %v966_v41  ;;  %v1090_v54 = vadd.f32 %v1749_v46, %v990_v42  ;;  %v544_v55 = vadd.f32 %v1721_v33, %v543_v51  ;;  %v604_v56 = vadd.f32 %v1721_v33, %v603_v52 }
  0xc4   :  { %1209 = vst [vmem:[%s2393_s5 + $0x1b0] sm:$0xff] %v1113_v47  ;;  %v818_v57 = vmul.f32 0.01, %v661_v49  ;;  %v842_v58 = vmul.f32 0.01, %v721_v50 }
  0xc5   :  { %1233 = vst [vmem:[%s2393_s5 + $0x270] sm:$0xff] %v1137_v48  ;;  %v771_v59 = vmul.f32 0.01, %v544_v55  ;;  %v795_v60 = vmul.f32 0.01, %v604_v56 }
  0xc6   :  { %1162 = vst [vmem:[%s2393_s5 + $0x38] sm:$0xff] %v1066_v53  ;;  %v914_v61 = vmax.f32 %v661_v49, %v818_v57  ;;  %v938_v62 = vmax.f32 %v721_v50, %v842_v58 }
  0xc7   :  { %1186 = vst [vmem:[%s2393_s5 + $0xf8] sm:$0xff] %v1090_v54  ;;  %v867_v63 = vmax.f32 %v544_v55, %v771_v59  ;;  %v891_v0 = vmax.f32 %v604_v56, %v795_v60 }
  0xc8   :  { %v1014_v1 = vmul.f32 %v1740_v43, %v914_v61  ;;  %v1038_v2 = vmul.f32 %v1740_v43, %v938_v62 }
  0xc9   :  { %v967_v3 = vmul.f32 %v1740_v43, %v867_v63  ;;  %v991_v4 = vmul.f32 %v1740_v43, %v891_v0  ;;  %v663_v5 = vpop.f32.mrf.mxu2  ;;  %v723_v6 = vpop.f32.mrf.mxu3 }
  0xca   :  { %v1114_v7 = vadd.f32 %v1749_v46, %v1014_v1  ;;  %v1138_v8 = vadd.f32 %v1749_v46, %v1038_v2  ;;  %v664_v9 = vadd.f32 %v1721_v33, %v663_v5  ;;  %v724_v10 = vadd.f32 %v1721_v33, %v723_v6  ;;  %v545_v11 = vpop.f32.mrf.mxu0  ;;  %v605_v12 = vpop.f32.mrf.mxu1 }
  0xcb   :  { %v1067_v13 = vadd.f32 %v1749_v46, %v967_v3  ;;  %v1091_v14 = vadd.f32 %v1749_v46, %v991_v4  ;;  %v546_v15 = vadd.f32 %v1721_v33, %v545_v11  ;;  %v606_v16 = vadd.f32 %v1721_v33, %v605_v12 }
  0xcc   :  { %1210 = vst [vmem:[%s2393_s5 + $0x1b8] sm:$0xff] %v1114_v7  ;;  %v819_v17 = vmul.f32 0.01, %v664_v9  ;;  %v843_v18 = vmul.f32 0.01, %v724_v10 }
  0xcd   :  { %1234 = vst [vmem:[%s2393_s5 + $0x278] sm:$0xff] %v1138_v8  ;;  %v772_v19 = vmul.f32 0.01, %v546_v15  ;;  %v796_v20 = vmul.f32 0.01, %v606_v16 }
  0xce   :  { %1163 = vst [vmem:[%s2393_s5 + $0x40] sm:$0xff] %v1067_v13  ;;  %v915_v21 = vmax.f32 %v664_v9, %v819_v17  ;;  %v939_v22 = vmax.f32 %v724_v10, %v843_v18 }
  0xcf   :  { %1187 = vst [vmem:[%s2393_s5 + $0x100] sm:$0xff] %v1091_v14  ;;  %v868_v23 = vmax.f32 %v546_v15, %v772_v19  ;;  %v892_v24 = vmax.f32 %v606_v16, %v796_v20 }
  0xd0   :  { %v1015_v25 = vmul.f32 %v1740_v43, %v915_v21  ;;  %v1039_v26 = vmul.f32 %v1740_v43, %v939_v22 }
  0xd1   :  { %v968_v27 = vmul.f32 %v1740_v43, %v868_v23  ;;  %v992_v28 = vmul.f32 %v1740_v43, %v892_v24  ;;  %v665_v29 = vpop.f32.mrf.mxu2  ;;  %v725_v30 = vpop.f32.mrf.mxu3 }
  0xd2   :  { %v1115_v31 = vadd.f32 %v1749_v46, %v1015_v25  ;;  %v1139_v32 = vadd.f32 %v1749_v46, %v1039_v26  ;;  %v666_v34 = vadd.f32 %v1721_v33, %v665_v29  ;;  %v726_v35 = vadd.f32 %v1721_v33, %v725_v30  ;;  %v548_v36 = vpop.f32.mrf.mxu0  ;;  %v608_v37 = vpop.f32.mrf.mxu1 }
  0xd3   :  { %v1068_v38 = vadd.f32 %v1749_v46, %v968_v27  ;;  %v1092_v39 = vadd.f32 %v1749_v46, %v992_v28  ;;  %v549_v40 = vadd.f32 %v1721_v33, %v548_v36  ;;  %v609_v41 = vadd.f32 %v1721_v33, %v608_v37 }
  0xd4   :  { %1211 = vst [vmem:[%s2393_s5 + $0x1c0] sm:$0xff] %v1115_v31  ;;  %v820_v42 = vmul.f32 0.01, %v666_v34  ;;  %v844_v44 = vmul.f32 0.01, %v726_v35 }
  0xd5   :  { %1235 = vst [vmem:[%s2393_s5 + $0x280] sm:$0xff] %v1139_v32  ;;  %v773_v45 = vmul.f32 0.01, %v549_v40  ;;  %v797_v47 = vmul.f32 0.01, %v609_v41 }
  0xd6   :  { %1164 = vst [vmem:[%s2393_s5 + $0x48] sm:$0xff] %v1068_v38  ;;  %v916_v48 = vmax.f32 %v666_v34, %v820_v42  ;;  %v940_v49 = vmax.f32 %v726_v35, %v844_v44 }
  0xd7   :  { %1188 = vst [vmem:[%s2393_s5 + $0x108] sm:$0xff] %v1092_v39  ;;  %v869_v50 = vmax.f32 %v549_v40, %v773_v45  ;;  %v893_v51 = vmax.f32 %v609_v41, %v797_v47 }
  0xd8   :  { %v1016_v52 = vmul.f32 %v1740_v43, %v916_v48  ;;  %v1040_v53 = vmul.f32 %v1740_v43, %v940_v49 }
  0xd9   :  { %v969_v54 = vmul.f32 %v1740_v43, %v869_v50  ;;  %v993_v55 = vmul.f32 %v1740_v43, %v893_v51  ;;  %v668_v56 = vpop.f32.mrf.mxu2  ;;  %v728_v57 = vpop.f32.mrf.mxu3 }
  0xda   :  { %v1116_v58 = vadd.f32 %v1749_v46, %v1016_v52  ;;  %v1140_v59 = vadd.f32 %v1749_v46, %v1040_v53  ;;  %v669_v60 = vadd.f32 %v1721_v33, %v668_v56  ;;  %v729_v61 = vadd.f32 %v1721_v33, %v728_v57  ;;  %v550_v62 = vpop.f32.mrf.mxu0  ;;  %v610_v63 = vpop.f32.mrf.mxu1 }
  0xdb   :  { %v1069_v0 = vadd.f32 %v1749_v46, %v969_v54  ;;  %v1093_v1 = vadd.f32 %v1749_v46, %v993_v55  ;;  %v551_v2 = vadd.f32 %v1721_v33, %v550_v62  ;;  %v611_v3 = vadd.f32 %v1721_v33, %v610_v63 }
  0xdc   :  { %1212 = vst [vmem:[%s2393_s5 + $0x1c8] sm:$0xff] %v1116_v58  ;;  %v821_v4 = vmul.f32 0.01, %v669_v60  ;;  %v845_v5 = vmul.f32 0.01, %v729_v61 }
  0xdd   :  { %1236 = vst [vmem:[%s2393_s5 + $0x288] sm:$0xff] %v1140_v59  ;;  %v774_v6 = vmul.f32 0.01, %v551_v2  ;;  %v798_v7 = vmul.f32 0.01, %v611_v3 }
  0xde   :  { %1165 = vst [vmem:[%s2393_s5 + $0x50] sm:$0xff] %v1069_v0  ;;  %v917_v8 = vmax.f32 %v669_v60, %v821_v4  ;;  %v941_v9 = vmax.f32 %v729_v61, %v845_v5 }
  0xdf   :  { %1189 = vst [vmem:[%s2393_s5 + $0x110] sm:$0xff] %v1093_v1  ;;  %v870_v10 = vmax.f32 %v551_v2, %v774_v6  ;;  %v894_v11 = vmax.f32 %v611_v3, %v798_v7 }
  0xe0   :  { %v1017_v12 = vmul.f32 %v1740_v43, %v917_v8  ;;  %v1041_v13 = vmul.f32 %v1740_v43, %v941_v9 }
  0xe1   :  { %v970_v14 = vmul.f32 %v1740_v43, %v870_v10  ;;  %v994_v15 = vmul.f32 %v1740_v43, %v894_v11  ;;  %v670_v16 = vpop.f32.mrf.mxu2  ;;  %v730_v17 = vpop.f32.mrf.mxu3 }
  0xe2   :  { %v1117_v18 = vadd.f32 %v1749_v46, %v1017_v12  ;;  %v1141_v19 = vadd.f32 %v1749_v46, %v1041_v13  ;;  %v671_v20 = vadd.f32 %v1721_v33, %v670_v16  ;;  %v731_v21 = vadd.f32 %v1721_v33, %v730_v17  ;;  %v553_v22 = vpop.f32.mrf.mxu0  ;;  %v613_v23 = vpop.f32.mrf.mxu1 }
  0xe3   :  { %v1070_v24 = vadd.f32 %v1749_v46, %v970_v14  ;;  %v1094_v25 = vadd.f32 %v1749_v46, %v994_v15  ;;  %v554_v26 = vadd.f32 %v1721_v33, %v553_v22  ;;  %v614_v27 = vadd.f32 %v1721_v33, %v613_v23 }
  0xe4   :  { %1213 = vst [vmem:[%s2393_s5 + $0x1d0] sm:$0xff] %v1117_v18  ;;  %v822_v28 = vmul.f32 0.01, %v671_v20  ;;  %v846_v29 = vmul.f32 0.01, %v731_v21 }
  0xe5   :  { %1237 = vst [vmem:[%s2393_s5 + $0x290] sm:$0xff] %v1141_v19  ;;  %v775_v30 = vmul.f32 0.01, %v554_v26  ;;  %v799_v31 = vmul.f32 0.01, %v614_v27 }
  0xe6   :  { %1166 = vst [vmem:[%s2393_s5 + $0x58] sm:$0xff] %v1070_v24  ;;  %v918_v32 = vmax.f32 %v671_v20, %v822_v28  ;;  %v942_v34 = vmax.f32 %v731_v21, %v846_v29 }
  0xe7   :  { %1190 = vst [vmem:[%s2393_s5 + $0x118] sm:$0xff] %v1094_v25  ;;  %v871_v35 = vmax.f32 %v554_v26, %v775_v30  ;;  %v895_v36 = vmax.f32 %v614_v27, %v799_v31 }
  0xe8   :  { %v1018_v37 = vmul.f32 %v1740_v43, %v918_v32  ;;  %v1042_v38 = vmul.f32 %v1740_v43, %v942_v34 }
  0xe9   :  { %v971_v39 = vmul.f32 %v1740_v43, %v871_v35  ;;  %v995_v40 = vmul.f32 %v1740_v43, %v895_v36  ;;  %v673_v41 = vpop.f32.mrf.mxu2  ;;  %v733_v42 = vpop.f32.mrf.mxu3 }
  0xea   :  { %v1118_v44 = vadd.f32 %v1749_v46, %v1018_v37  ;;  %v1142_v45 = vadd.f32 %v1749_v46, %v1042_v38  ;;  %v674_v47 = vadd.f32 %v1721_v33, %v673_v41  ;;  %v734_v48 = vadd.f32 %v1721_v33, %v733_v42  ;;  %v555_v49 = vpop.f32.mrf.mxu0  ;;  %v615_v50 = vpop.f32.mrf.mxu1 }
  0xeb   :  { %v1071_v51 = vadd.f32 %v1749_v46, %v971_v39  ;;  %v1095_v52 = vadd.f32 %v1749_v46, %v995_v40  ;;  %v556_v53 = vadd.f32 %v1721_v33, %v555_v49  ;;  %v616_v54 = vadd.f32 %v1721_v33, %v615_v50 }
  0xec   :  { %1214 = vst [vmem:[%s2393_s5 + $0x1d8] sm:$0xff] %v1118_v44  ;;  %v823_v55 = vmul.f32 0.01, %v674_v47  ;;  %v847_v56 = vmul.f32 0.01, %v734_v48 }
  0xed   :  { %1238 = vst [vmem:[%s2393_s5 + $0x298] sm:$0xff] %v1142_v45  ;;  %v776_v57 = vmul.f32 0.01, %v556_v53  ;;  %v800_v58 = vmul.f32 0.01, %v616_v54 }
  0xee   :  { %1167 = vst [vmem:[%s2393_s5 + $0x60] sm:$0xff] %v1071_v51  ;;  %v919_v59 = vmax.f32 %v674_v47, %v823_v55  ;;  %v943_v60 = vmax.f32 %v734_v48, %v847_v56 }
  0xef   :  { %1191 = vst [vmem:[%s2393_s5 + $0x120] sm:$0xff] %v1095_v52  ;;  %v872_v61 = vmax.f32 %v556_v53, %v776_v57  ;;  %v896_v62 = vmax.f32 %v616_v54, %v800_v58 }
  0xf0   :  { %v1019_v63 = vmul.f32 %v1740_v43, %v919_v59  ;;  %v1043_v0 = vmul.f32 %v1740_v43, %v943_v60 }
  0xf1   :  { %v972_v1 = vmul.f32 %v1740_v43, %v872_v61  ;;  %v996_v2 = vmul.f32 %v1740_v43, %v896_v62  ;;  %v675_v3 = vpop.f32.mrf.mxu2  ;;  %v735_v4 = vpop.f32.mrf.mxu3 }
  0xf2   :  { %v1119_v5 = vadd.f32 %v1749_v46, %v1019_v63  ;;  %v1143_v6 = vadd.f32 %v1749_v46, %v1043_v0  ;;  %v676_v7 = vadd.f32 %v1721_v33, %v675_v3  ;;  %v736_v8 = vadd.f32 %v1721_v33, %v735_v4  ;;  %v558_v9 = vpop.f32.mrf.mxu0  ;;  %v618_v10 = vpop.f32.mrf.mxu1 }
  0xf3   :  { %v1072_v11 = vadd.f32 %v1749_v46, %v972_v1  ;;  %v1096_v12 = vadd.f32 %v1749_v46, %v996_v2  ;;  %v559_v13 = vadd.f32 %v1721_v33, %v558_v9  ;;  %v619_v14 = vadd.f32 %v1721_v33, %v618_v10 }
  0xf4   :  { %1215 = vst [vmem:[%s2393_s5 + $0x1e0] sm:$0xff] %v1119_v5  ;;  %v824_v15 = vmul.f32 0.01, %v676_v7  ;;  %v848_v16 = vmul.f32 0.01, %v736_v8 }
  0xf5   :  { %1239 = vst [vmem:[%s2393_s5 + $0x2a0] sm:$0xff] %v1143_v6  ;;  %v777_v17 = vmul.f32 0.01, %v559_v13  ;;  %v801_v18 = vmul.f32 0.01, %v619_v14 }
  0xf6   :  { %1168 = vst [vmem:[%s2393_s5 + $0x68] sm:$0xff] %v1072_v11  ;;  %v920_v19 = vmax.f32 %v676_v7, %v824_v15  ;;  %v944_v20 = vmax.f32 %v736_v8, %v848_v16 }
  0xf7   :  { %1192 = vst [vmem:[%s2393_s5 + $0x128] sm:$0xff] %v1096_v12  ;;  %v873_v21 = vmax.f32 %v559_v13, %v777_v17  ;;  %v897_v22 = vmax.f32 %v619_v14, %v801_v18 }
  0xf8   :  { %v1020_v23 = vmul.f32 %v1740_v43, %v920_v19  ;;  %v1044_v24 = vmul.f32 %v1740_v43, %v944_v20 }
  0xf9   :  { %v973_v25 = vmul.f32 %v1740_v43, %v873_v21  ;;  %v997_v26 = vmul.f32 %v1740_v43, %v897_v22  ;;  %v678_v27 = vpop.f32.mrf.mxu2  ;;  %v738_v28 = vpop.f32.mrf.mxu3 }
  0xfa   :  { %v1120_v29 = vadd.f32 %v1749_v46, %v1020_v23  ;;  %v1144_v30 = vadd.f32 %v1749_v46, %v1044_v24  ;;  %v679_v31 = vadd.f32 %v1721_v33, %v678_v27  ;;  %v739_v32 = vadd.f32 %v1721_v33, %v738_v28  ;;  %v560_v34 = vpop.f32.mrf.mxu0  ;;  %v620_v35 = vpop.f32.mrf.mxu1 }
  0xfb   :  { %v1073_v36 = vadd.f32 %v1749_v46, %v973_v25  ;;  %v1097_v37 = vadd.f32 %v1749_v46, %v997_v26  ;;  %v561_v38 = vadd.f32 %v1721_v33, %v560_v34  ;;  %v621_v39 = vadd.f32 %v1721_v33, %v620_v35 }
  0xfc   :  { %1216 = vst [vmem:[%s2393_s5 + $0x1e8] sm:$0xff] %v1120_v29  ;;  %v825_v40 = vmul.f32 0.01, %v679_v31  ;;  %v849_v41 = vmul.f32 0.01, %v739_v32 }
  0xfd   :  { %1240 = vst [vmem:[%s2393_s5 + $0x2a8] sm:$0xff] %v1144_v30  ;;  %v778_v42 = vmul.f32 0.01, %v561_v38  ;;  %v802_v44 = vmul.f32 0.01, %v621_v39 }
  0xfe   :  { %1169 = vst [vmem:[%s2393_s5 + $0x70] sm:$0xff] %v1073_v36  ;;  %v921_v45 = vmax.f32 %v679_v31, %v825_v40  ;;  %v945_v47 = vmax.f32 %v739_v32, %v849_v41 }
  0xff   :  { %1193 = vst [vmem:[%s2393_s5 + $0x130] sm:$0xff] %v1097_v37  ;;  %v874_v48 = vmax.f32 %v561_v38, %v778_v42  ;;  %v898_v49 = vmax.f32 %v621_v39, %v802_v44  ;;  %v2206_v42 = vld [vmem:[%s2390_s2] ss:$0 sm:$0xff] }
 0x100   :  { %v1021_v50 = vmul.f32 %v1740_v43, %v921_v45  ;;  %v1045_v51 = vmul.f32 %v1740_v43, %v945_v47 }
 0x101   :  { %v974_v52 = vmul.f32 %v1740_v43, %v874_v48  ;;  %v998_v53 = vmul.f32 %v1740_v43, %v898_v49  ;;  %v680_v54 = vpop.f32.mrf.mxu2  ;;  %v740_v55 = vpop.f32.mrf.mxu3 }
 0x102   :  { %v1121_v56 = vadd.f32 %v1749_v46, %v1021_v50  ;;  %v1145_v57 = vadd.f32 %v1749_v46, %v1045_v51  ;;  %v681_v58 = vadd.f32 %v1721_v33, %v680_v54  ;;  %v741_v59 = vadd.f32 %v1721_v33, %v740_v55  ;;  %v563_v60 = vpop.f32.mrf.mxu0  ;;  %v623_v61 = vpop.f32.mrf.mxu1 }
 0x103   :  { %v1074_v62 = vadd.f32 %v1749_v46, %v974_v52  ;;  %v1098_v63 = vadd.f32 %v1749_v46, %v998_v53  ;;  %v564_v0 = vadd.f32 %v1721_v33, %v563_v60  ;;  %v624_v1 = vadd.f32 %v1721_v33, %v623_v61 }
 0x104   :  { %1217 = vst [vmem:[%s2393_s5 + $0x1f0] sm:$0xff] %v1121_v56  ;;  %v826_v2 = vmul.f32 0.01, %v681_v58  ;;  %v850_v3 = vmul.f32 0.01, %v741_v59 }
 0x105   :  { %1241 = vst [vmem:[%s2393_s5 + $0x2b0] sm:$0xff] %v1145_v57  ;;  %v779_v4 = vmul.f32 0.01, %v564_v0  ;;  %v803_v5 = vmul.f32 0.01, %v624_v1 }
 0x106   :  { %1170 = vst [vmem:[%s2393_s5 + $0x78] sm:$0xff] %v1074_v62  ;;  %v922_v6 = vmax.f32 %v681_v58, %v826_v2  ;;  %v946_v7 = vmax.f32 %v741_v59, %v850_v3  ;;  %v2229_v59 = vld [vmem:[%s2391_s3] ss:$0 sm:$0xff] }
 0x107   :  { %1194 = vst [vmem:[%s2393_s5 + $0x138] sm:$0xff] %v1098_v63  ;;  %v875_v8 = vmax.f32 %v564_v0, %v779_v4  ;;  %v899_v9 = vmax.f32 %v624_v1, %v803_v5  ;;  %v2238_v2 = vld [vmem:[%s2392_s4] ss:$0 sm:$0xff] }
 0x108   :  { %v1022_v10 = vmul.f32 %v1740_v43, %v922_v6  ;;  %v1046_v11 = vmul.f32 %v1740_v43, %v946_v7 }
 0x109   :  { %v975_v12 = vmul.f32 %v1740_v43, %v875_v8  ;;  %v999_v13 = vmul.f32 %v1740_v43, %v899_v9  ;;  %v683_v14 = vpop.f32.mrf.mxu2  ;;  %v743_v15 = vpop.f32.mrf.mxu3 }
 0x10a   :  { %v1122_v16 = vadd.f32 %v1749_v46, %v1022_v10  ;;  %v1146_v17 = vadd.f32 %v1749_v46, %v1046_v11  ;;  %v684_v18 = vadd.f32 %v1721_v33, %v683_v14  ;;  %v744_v19 = vadd.f32 %v1721_v33, %v743_v15  ;;  %v565_v20 = vpop.f32.mrf.mxu0  ;;  %v625_v21 = vpop.f32.mrf.mxu1 }
 0x10b   :  { %v1075_v22 = vadd.f32 %v1749_v46, %v975_v12  ;;  %v1099_v23 = vadd.f32 %v1749_v46, %v999_v13  ;;  %v566_v24 = vadd.f32 %v1721_v33, %v565_v20  ;;  %v626_v25 = vadd.f32 %v1721_v33, %v625_v21 }
 0x10c   :  { %1218 = vst [vmem:[%s2393_s5 + $0x1f8] sm:$0xff] %v1122_v16  ;;  %v827_v26 = vmul.f32 0.01, %v684_v18  ;;  %v851_v27 = vmul.f32 0.01, %v744_v19 }
 0x10d   :  { %1242 = vst [vmem:[%s2393_s5 + $0x2b8] sm:$0xff] %v1146_v17  ;;  %v780_v28 = vmul.f32 0.01, %v566_v24  ;;  %v804_v29 = vmul.f32 0.01, %v626_v25 }
 0x10e   :  { %1171 = vst [vmem:[%s2393_s5 + $0x80] sm:$0xff] %v1075_v22  ;;  %v923_v30 = vmax.f32 %v684_v18, %v827_v26  ;;  %v947_v31 = vmax.f32 %v744_v19, %v851_v27 }
 0x10f   :  { %1195 = vst [vmem:[%s2393_s5 + $0x140] sm:$0xff] %v1099_v23  ;;  %v876_v33 = vmax.f32 %v566_v24, %v780_v28  ;;  %v900_v32 = vmax.f32 %v626_v25, %v804_v29 }
 0x110   :  { %v1023_v34 = vmul.f32 %v1740_v43, %v923_v30  ;;  %v1047_v35 = vmul.f32 %v1740_v43, %v947_v31 }
 0x111   :  { %v976_v36 = vmul.f32 %v1740_v43, %v876_v33  ;;  %v1000_v37 = vmul.f32 %v1740_v43, %v900_v32  ;;  %v685_v38 = vpop.f32.mrf.mxu2  ;;  %v745_v39 = vpop.f32.mrf.mxu3 }
 0x112   :  { %v1123_v40 = vadd.f32 %v1749_v46, %v1023_v34  ;;  %v1147_v41 = vadd.f32 %v1749_v46, %v1047_v35  ;;  %v686_v44 = vadd.f32 %v2206_v42, %v685_v38  ;;  %v746_v45 = vadd.f32 %v2206_v42, %v745_v39  ;;  %v568_v47 = vpop.f32.mrf.mxu0  ;;  %v628_v48 = vpop.f32.mrf.mxu1 }
 0x113   :  { %v1076_v49 = vadd.f32 %v1749_v46, %v976_v36  ;;  %v1100_v43 = vadd.f32 %v1749_v46, %v1000_v37  ;;  %v569_v50 = vadd.f32 %v2206_v42, %v568_v47  ;;  %v629_v51 = vadd.f32 %v2206_v42, %v628_v48 }
 0x114   :  { %1219 = vst [vmem:[%s2393_s5 + $0x200] sm:$0xff] %v1123_v40  ;;  %v828_v52 = vmul.f32 0.01, %v686_v44  ;;  %v852_v53 = vmul.f32 0.01, %v746_v45 }
 0x115   :  { %1243 = vst [vmem:[%s2393_s5 + $0x2c0] sm:$0xff] %v1147_v41  ;;  %v781_v54 = vmul.f32 0.01, %v569_v50  ;;  %v805_v55 = vmul.f32 0.01, %v629_v51 }
 0x116   :  { %1172 = vst [vmem:[%s2393_s5 + $0x88] sm:$0xff] %v1076_v49  ;;  %v924_v46 = vmax.f32 %v686_v44, %v828_v52  ;;  %v948_v56 = vmax.f32 %v746_v45, %v852_v53 }
 0x117   :  { %1196 = vst [vmem:[%s2393_s5 + $0x148] sm:$0xff] %v1100_v43  ;;  %v877_v57 = vmax.f32 %v569_v50, %v781_v54  ;;  %v901_v58 = vmax.f32 %v629_v51, %v805_v55 }
 0x118   :  { %v1024_v60 = vmul.f32 %v2229_v59, %v924_v46  ;;  %v1048_v61 = vmul.f32 %v2229_v59, %v948_v56 }
 0x119   :  { %v977_v62 = vmul.f32 %v2229_v59, %v877_v57  ;;  %v1001_v63 = vmul.f32 %v2229_v59, %v901_v58  ;;  %v688_v0 = vpop.f32.mrf.mxu2  ;;  %v748_v1 = vpop.f32.mrf.mxu3 }
 0x11a   :  { %v1124_v3 = vadd.f32 %v2238_v2, %v1024_v60  ;;  %v1148_v4 = vadd.f32 %v2238_v2, %v1048_v61  ;;  %v689_v5 = vadd.f32 %v2206_v42, %v688_v0  ;;  %v749_v6 = vadd.f32 %v2206_v42, %v748_v1  ;;  %v570_v7 = vpop.f32.mrf.mxu0  ;;  %v630_v8 = vpop.f32.mrf.mxu1 }
 0x11b   :  { %v1077_v9 = vadd.f32 %v2238_v2, %v977_v62  ;;  %v1101_v10 = vadd.f32 %v2238_v2, %v1001_v63  ;;  %v571_v11 = vadd.f32 %v2206_v42, %v570_v7  ;;  %v631_v12 = vadd.f32 %v2206_v42, %v630_v8 }
 0x11c   :  { %1220 = vst [vmem:[%s2393_s5 + $0x208] sm:$0xff] %v1124_v3  ;;  %v829_v13 = vmul.f32 0.01, %v689_v5  ;;  %v853_v14 = vmul.f32 0.01, %v749_v6 }
 0x11d   :  { %1244 = vst [vmem:[%s2393_s5 + $0x2c8] sm:$0xff] %v1148_v4  ;;  %v782_v15 = vmul.f32 0.01, %v571_v11  ;;  %v806_v16 = vmul.f32 0.01, %v631_v12 }
 0x11e   :  { %1173 = vst [vmem:[%s2393_s5 + $0x90] sm:$0xff] %v1077_v9  ;;  %v925_v17 = vmax.f32 %v689_v5, %v829_v13  ;;  %v949_v18 = vmax.f32 %v749_v6, %v853_v14 }
 0x11f   :  { %1197 = vst [vmem:[%s2393_s5 + $0x150] sm:$0xff] %v1101_v10  ;;  %v878_v19 = vmax.f32 %v571_v11, %v782_v15  ;;  %v902_v20 = vmax.f32 %v631_v12, %v806_v16 }
 0x120   :  { %v1025_v21 = vmul.f32 %v2229_v59, %v925_v17  ;;  %v1049_v22 = vmul.f32 %v2229_v59, %v949_v18 }
 0x121   :  { %v978_v23 = vmul.f32 %v2229_v59, %v878_v19  ;;  %v1002_v24 = vmul.f32 %v2229_v59, %v902_v20  ;;  %v690_v25 = vpop.f32.mrf.mxu2  ;;  %v750_v26 = vpop.f32.mrf.mxu3 }
 0x122   :  { %v1125_v27 = vadd.f32 %v2238_v2, %v1025_v21  ;;  %v1149_v28 = vadd.f32 %v2238_v2, %v1049_v22  ;;  %v691_v29 = vadd.f32 %v2206_v42, %v690_v25  ;;  %v751_v30 = vadd.f32 %v2206_v42, %v750_v26  ;;  %v573_v31 = vpop.f32.mrf.mxu0  ;;  %v633_v33 = vpop.f32.mrf.mxu1 }
 0x123   :  { %v1078_v32 = vadd.f32 %v2238_v2, %v978_v23  ;;  %v1102_v34 = vadd.f32 %v2238_v2, %v1002_v24  ;;  %v574_v35 = vadd.f32 %v2206_v42, %v573_v31  ;;  %v634_v36 = vadd.f32 %v2206_v42, %v633_v33 }
 0x124   :  { %1221 = vst [vmem:[%s2393_s5 + $0x210] sm:$0xff] %v1125_v27  ;;  %v830_v37 = vmul.f32 0.01, %v691_v29  ;;  %v854_v38 = vmul.f32 0.01, %v751_v30 }
 0x125   :  { %1245 = vst [vmem:[%s2393_s5 + $0x2d0] sm:$0xff] %v1149_v28  ;;  %v783_v39 = vmul.f32 0.01, %v574_v35  ;;  %v807_v40 = vmul.f32 0.01, %v634_v36 }
 0x126   :  { %1174 = vst [vmem:[%s2393_s5 + $0x98] sm:$0xff] %v1078_v32  ;;  %v926_v41 = vmax.f32 %v691_v29, %v830_v37  ;;  %v950_v44 = vmax.f32 %v751_v30, %v854_v38 }
 0x127   :  { %1198 = vst [vmem:[%s2393_s5 + $0x158] sm:$0xff] %v1102_v34  ;;  %v879_v45 = vmax.f32 %v574_v35, %v783_v39  ;;  %v903_v47 = vmax.f32 %v634_v36, %v807_v40 }
 0x128   :  { %v1026_v48 = vmul.f32 %v2229_v59, %v926_v41  ;;  %v1050_v49 = vmul.f32 %v2229_v59, %v950_v44 }
 0x129   :  { %v979_v43 = vmul.f32 %v2229_v59, %v879_v45  ;;  %v1003_v50 = vmul.f32 %v2229_v59, %v903_v47  ;;  %v693_v51 = vpop.f32.mrf.mxu2  ;;  %v753_v52 = vpop.f32.mrf.mxu3 }
 0x12a   :  { %v1126_v53 = vadd.f32 %v2238_v2, %v1026_v48  ;;  %v1150_v54 = vadd.f32 %v2238_v2, %v1050_v49  ;;  %v694_v55 = vadd.f32 %v2206_v42, %v693_v51  ;;  %v754_v46 = vadd.f32 %v2206_v42, %v753_v52  ;;  %v575_v56 = vpop.f32.mrf.mxu0  ;;  %v635_v57 = vpop.f32.mrf.mxu1 }
 0x12b   :  { %v1079_v58 = vadd.f32 %v2238_v2, %v979_v43  ;;  %v1103_v60 = vadd.f32 %v2238_v2, %v1003_v50  ;;  %v576_v61 = vadd.f32 %v2206_v42, %v575_v56  ;;  %v636_v62 = vadd.f32 %v2206_v42, %v635_v57 }
 0x12c   :  { %1222 = vst [vmem:[%s2393_s5 + $0x218] sm:$0xff] %v1126_v53  ;;  %v831_v63 = vmul.f32 0.01, %v694_v55  ;;  %v855_v0 = vmul.f32 0.01, %v754_v46 }
 0x12d   :  { %1246 = vst [vmem:[%s2393_s5 + $0x2d8] sm:$0xff] %v1150_v54  ;;  %v784_v1 = vmul.f32 0.01, %v576_v61  ;;  %v808_v3 = vmul.f32 0.01, %v636_v62 }
 0x12e   :  { %1175 = vst [vmem:[%s2393_s5 + $0xa0] sm:$0xff] %v1079_v58  ;;  %v927_v4 = vmax.f32 %v694_v55, %v831_v63  ;;  %v951_v5 = vmax.f32 %v754_v46, %v855_v0 }
 0x12f   :  { %1199 = vst [vmem:[%s2393_s5 + $0x160] sm:$0xff] %v1103_v60  ;;  %v880_v6 = vmax.f32 %v576_v61, %v784_v1  ;;  %v904_v7 = vmax.f32 %v636_v62, %v808_v3 }
 0x130   :  { %v1027_v8 = vmul.f32 %v2229_v59, %v927_v4  ;;  %v1051_v9 = vmul.f32 %v2229_v59, %v951_v5 }
 0x131   :  { %v980_v10 = vmul.f32 %v2229_v59, %v880_v6  ;;  %v1004_v11 = vmul.f32 %v2229_v59, %v904_v7  ;;  %v695_v12 = vpop.f32.mrf.mxu2  ;;  %v755_v13 = vpop.f32.mrf.mxu3 }
 0x132   :  { %v1127_v14 = vadd.f32 %v2238_v2, %v1027_v8  ;;  %v1151_v15 = vadd.f32 %v2238_v2, %v1051_v9  ;;  %v696_v16 = vadd.f32 %v2206_v42, %v695_v12  ;;  %v756_v17 = vadd.f32 %v2206_v42, %v755_v13  ;;  %v578_v18 = vpop.f32.mrf.mxu0  ;;  %v638_v19 = vpop.f32.mrf.mxu1 }
 0x133   :  { %v1080_v20 = vadd.f32 %v2238_v2, %v980_v10  ;;  %v1104_v21 = vadd.f32 %v2238_v2, %v1004_v11  ;;  %v579_v22 = vadd.f32 %v2206_v42, %v578_v18  ;;  %v639_v23 = vadd.f32 %v2206_v42, %v638_v19 }
 0x134   :  { %1223 = vst [vmem:[%s2393_s5 + $0x220] sm:$0xff] %v1127_v14  ;;  %v832_v24 = vmul.f32 0.01, %v696_v16  ;;  %v856_v25 = vmul.f32 0.01, %v756_v17 }
 0x135   :  { %1247 = vst [vmem:[%s2393_s5 + $0x2e0] sm:$0xff] %v1151_v15  ;;  %v785_v26 = vmul.f32 0.01, %v579_v22  ;;  %v809_v27 = vmul.f32 0.01, %v639_v23 }
 0x136   :  { %1176 = vst [vmem:[%s2393_s5 + $0xa8] sm:$0xff] %v1080_v20  ;;  %v928_v28 = vmax.f32 %v696_v16, %v832_v24  ;;  %v952_v29 = vmax.f32 %v756_v17, %v856_v25 }
 0x137   :  { %1200 = vst [vmem:[%s2393_s5 + $0x168] sm:$0xff] %v1104_v21  ;;  %v881_v30 = vmax.f32 %v579_v22, %v785_v26  ;;  %v905_v31 = vmax.f32 %v639_v23, %v809_v27 }
 0x138   :  { %v1028_v33 = vmul.f32 %v2229_v59, %v928_v28  ;;  %v1052_v32 = vmul.f32 %v2229_v59, %v952_v29 }
 0x139   :  { %v981_v34 = vmul.f32 %v2229_v59, %v881_v30  ;;  %v1005_v35 = vmul.f32 %v2229_v59, %v905_v31  ;;  %v698_v36 = vpop.f32.mrf.mxu2  ;;  %v758_v37 = vpop.f32.mrf.mxu3 }
 0x13a   :  { %v1128_v38 = vadd.f32 %v2238_v2, %v1028_v33  ;;  %v1152_v39 = vadd.f32 %v2238_v2, %v1052_v32  ;;  %v699_v40 = vadd.f32 %v2206_v42, %v698_v36  ;;  %v759_v41 = vadd.f32 %v2206_v42, %v758_v37  ;;  %v580_v44 = vpop.f32.mrf.mxu0  ;;  %v640_v45 = vpop.f32.mrf.mxu1 }
 0x13b   :  { %v1081_v47 = vadd.f32 %v2238_v2, %v981_v34  ;;  %v1105_v48 = vadd.f32 %v2238_v2, %v1005_v35  ;;  %v581_v49 = vadd.f32 %v2206_v42, %v580_v44  ;;  %v641_v43 = vadd.f32 %v2206_v42, %v640_v45 }
 0x13c   :  { %1224 = vst [vmem:[%s2393_s5 + $0x228] sm:$0xff] %v1128_v38  ;;  %v833_v50 = vmul.f32 0.01, %v699_v40  ;;  %v857_v51 = vmul.f32 0.01, %v759_v41 }
 0x13d   :  { %1248 = vst [vmem:[%s2393_s5 + $0x2e8] sm:$0xff] %v1152_v39  ;;  %v786_v52 = vmul.f32 0.01, %v581_v49  ;;  %v810_v53 = vmul.f32 0.01, %v641_v43 }
 0x13e   :  { %1177 = vst [vmem:[%s2393_s5 + $0xb0] sm:$0xff] %v1081_v47  ;;  %v929_v54 = vmax.f32 %v699_v40, %v833_v50  ;;  %v953_v55 = vmax.f32 %v759_v41, %v857_v51 }
 0x13f   :  { %1201 = vst [vmem:[%s2393_s5 + $0x170] sm:$0xff] %v1105_v48  ;;  %v882_v46 = vmax.f32 %v581_v49, %v786_v52  ;;  %v906_v56 = vmax.f32 %v641_v43, %v810_v53 }
 0x140   :  { %v1029_v57 = vmul.f32 %v2229_v59, %v929_v54  ;;  %v1053_v58 = vmul.f32 %v2229_v59, %v953_v55 }
 0x141   :  { %v982_v60 = vmul.f32 %v2229_v59, %v882_v46  ;;  %v1006_v61 = vmul.f32 %v2229_v59, %v906_v56  ;;  %v700_v62 = vpop.f32.mrf.mxu2  ;;  %v760_v63 = vpop.f32.mrf.mxu3 }
 0x142   :  { %v1129_v0 = vadd.f32 %v2238_v2, %v1029_v57  ;;  %v1153_v1 = vadd.f32 %v2238_v2, %v1053_v58  ;;  %v701_v3 = vadd.f32 %v2206_v42, %v700_v62  ;;  %v761_v4 = vadd.f32 %v2206_v42, %v760_v63 }
 0x143   :  { %v1082_v5 = vadd.f32 %v2238_v2, %v982_v60  ;;  %v1106_v6 = vadd.f32 %v2238_v2, %v1006_v61 }
 0x144   :  { %1225 = vst [vmem:[%s2393_s5 + $0x230] sm:$0xff] %v1129_v0  ;;  %v834_v7 = vmul.f32 0.01, %v701_v3  ;;  %v858_v8 = vmul.f32 0.01, %v761_v4 }
 0x145   :  { %1249 = vst [vmem:[%s2393_s5 + $0x2f0] sm:$0xff] %v1153_v1 }
 0x146   :  { %1178 = vst [vmem:[%s2393_s5 + $0xb8] sm:$0xff] %v1082_v5  ;;  %v930_v9 = vmax.f32 %v701_v3, %v834_v7  ;;  %v954_v42 = vmax.f32 %v761_v4, %v858_v8 }
 0x147   :  { %1202 = vst [vmem:[%s2393_s5 + $0x178] sm:$0xff] %v1106_v6 }
 0x148   :  { %v1030_v10 = vmul.f32 %v2229_v59, %v930_v9  ;;  %v1054_v11 = vmul.f32 %v2229_v59, %v954_v42 }
 0x14a   :  { %v1130_v12 = vadd.f32 %v2238_v2, %v1030_v10  ;;  %v1154_v13 = vadd.f32 %v2238_v2, %v1054_v11 }
 0x14c   :  { %1226 = vst [vmem:[%s2393_s5 + $0x238] sm:$0xff] %v1130_v12 }
 0x14d   :  { %1250 = vst [vmem:[%s2393_s5 + $0x2f8] sm:$0xff] %v1154_v13 }

</bundles_post_ra>
